<compile_context>
chip_gen: v6e
topology: v6e:2x2x1
jax: 0.10.0
libtpu: 0.0.40
codegen_flags: <defaults>
</compile_context>

<pallas_src>
import functools

import numpy as np
import jax
import jax.numpy as jnp
from jax.experimental import pallas as pl
from jax.experimental.pallas import tpu as pltpu

EPS = 1e-5  # PyTorch BatchNorm2d default


def make_divisible(x, divisible_by=8):
    return int(np.ceil(x * 1.0 / divisible_by) * divisible_by)


# ---------------------------------------------------------------------------
# host-side (numpy only!) precomputed border-validity masks -- cached safely
# ---------------------------------------------------------------------------

@functools.lru_cache(maxsize=None)
def _dw_masks_s1_np(N, H, W, K):
    """Factorized row/col validity masks for a stride-1 KxK depthwise conv on the
    flattened (N*H*W) grid.  rowm[a, m] = [0 <= i(m)+(a-pad) < H], colm[b, m] likewise."""
    pad = K // 2
    m = np.arange(N * H * W)
    i = (m // W) % H
    j = m % W
    rowm = np.stack([((i + (a - pad) >= 0) & (i + (a - pad) < H)) for a in range(K)])
    colm = np.stack([((j + (b - pad) >= 0) & (j + (b - pad) < W)) for b in range(K)])
    return rowm.astype(np.float32), colm.astype(np.float32)


@functools.lru_cache(maxsize=None)
def _dw_masks_s2_np(N, H, W, K):
    """Validity masks for the stride-2 KxK depthwise conv evaluated directly on the
    output (N*Ho*Wo) grid via input parity planes: tap (a,b) uses plane
    (da%2, db%2) shifted by (da//2, db//2)."""
    pad = K // 2
    Ho, Wo = H // 2, W // 2
    m = np.arange(N * Ho * Wo)
    i = (m // Wo) % Ho
    j = m % Wo
    rowm = np.stack([((i + ((a - pad) // 2) >= 0) & (i + ((a - pad) // 2) < Ho))
                     for a in range(K)])
    colm = np.stack([((j + ((b - pad) // 2) >= 0) & (j + ((b - pad) // 2) < Wo))
                     for b in range(K)])
    return rowm.astype(np.float32), colm.astype(np.float32)


# ---------------------------------------------------------------------------
# in-kernel building blocks (all operate on channel-major (C, M) f32 values)
# ---------------------------------------------------------------------------

def _pw(w_ref, x, pre_mask=None):
    """1x1 conv as a bf16 MXU matmul (f32 accumulate) + optional pre-BN ChannelSelector."""
    y = jnp.dot(w_ref[...].astype(jnp.bfloat16), x.astype(jnp.bfloat16),
                preferred_element_type=jnp.float32)
    if pre_mask is not None:
        y = y * pre_mask
    return y


def _bn(y, post_mask=None, relu=False):
    """BatchNorm2d(affine=False), training-mode batch stats over the lane (M) axis,
    two-pass biased variance; fused optional post-BN ChannelSelector and ReLU."""
    mean = jnp.mean(y, axis=1, keepdims=True)
    cen = y - mean
    var = jnp.mean(cen * cen, axis=1, keepdims=True)
    out = cen * jax.lax.rsqrt(var + EPS)
    if post_mask is not None:
        out = out * post_mask
    if relu:
        out = jnp.maximum(out, 0.0)
    return out


def _bn_planes(planes, post_mask=None, relu=False):
    """Same BN, but the per-channel batch statistics are combined over the four spatial
    parity planes (they partition the dense H*W grid, so this equals dense-grid BN)."""
    total = sum(p.shape[1] for p in planes)
    mean = sum(jnp.sum(p, axis=1, keepdims=True) for p in planes) / total
    var = sum(jnp.sum((p - mean) ** 2, axis=1, keepdims=True) for p in planes) / total
    inv = jax.lax.rsqrt(var + EPS)
    outs = []
    for p in planes:
        o = (p - mean) * inv
        if post_mask is not None:
            o = o * post_mask
        if relu:
            o = jnp.maximum(o, 0.0)
        outs.append(o)
    return outs


def _dw_s1(x, w, rowm, colm, K, row_w):
    """Stride-1 KxK depthwise conv (zero pad K//2) on the flat (C, M) layout.

    Factorization: C_b = colmask_b * roll(x, -db) (K-1 lane rolls), reused by every row
    tap; out = sum_a rowmask_a * roll(sum_b w[a,b]*C_b, -da*row_w) (K-1 more rolls).
    Total 2K-2 XLU rolls instead of K^2-1; masks are precomputed f32 inputs."""
    M = x.shape[1]
    pad = K // 2
    col_pieces = []
    for b in range(K):
        db = b - pad
        sh = x if db == 0 else pltpu.roll(x, (-db) % M, 1)
        col_pieces.append(sh * colm[b:b + 1, :])
    out = jnp.zeros_like(x)
    for a in range(K):
        da = a - pad
        s_a = col_pieces[0] * w[:, a * K:a * K + 1]
        for b in range(1, K):
            s_a = s_a + col_pieces[b] * w[:, a * K + b:a * K + b + 1]
        rolled = s_a if da == 0 else pltpu.roll(s_a, (-(da * row_w)) % M, 1)
        out = out + rolled * rowm[a:a + 1, :]
    return out


def _dw_s2(planes, w, rowm, colm, K, wo):
    """Stride-2 KxK depthwise conv (zero pad K//2) computed ONLY at output positions.

    `planes[2*p+q]` holds x[:, p::2, q::2] flattened to (C, N*Ho*Wo).  Tap (da, db)
    reads plane (da%2, db%2) rolled by (da//2)*Wo + (db//2); column-rolled+masked
    planes are memoized so the roll count stays O(K), not O(K^2)."""
    Mo = planes[0].shape[1]
    pad = K // 2
    memo = {}

    def col_piece(p, b):
        db = b - pad
        q, cb = db % 2, db // 2
        key = (p, q, cb)
        if key not in memo:
            src = planes[2 * p + q]
            sh = src if cb == 0 else pltpu.roll(src, (-cb) % Mo, 1)
            memo[key] = sh * colm[b:b + 1, :]
        return memo[key]

    out = jnp.zeros_like(planes[0])
    for a in range(K):
        da = a - pad
        p, ra = da % 2, da // 2
        s_a = col_piece(p, 0) * w[:, a * K:a * K + 1]
        for b in range(1, K):
            s_a = s_a + col_piece(p, b) * w[:, a * K + b:a * K + b + 1]
        rolled = s_a if ra == 0 else pltpu.roll(s_a, (-(ra * wo)) % Mo, 1)
        out = out + rolled * rowm[a:a + 1, :]
    return out


# ---------------------------------------------------------------------------
# fused whole-block kernels (one pallas_call per block forward)
# ---------------------------------------------------------------------------

def _make_sn_s1_kernel(K, w_img):
    def kernel(xm_ref, xp_ref, w1_ref, wd_ref, w2_ref, msk_ref, rowm_ref, colm_ref,
               o_ref):
        projc = xp_ref.shape[0]
        msk = msk_ref[...]
        rowm, colm = rowm_ref[...], colm_ref[...]
        y = _pw(w1_ref, xm_ref[...], msk)                    # pw1 + pre-BN CS
        y = _bn(y, msk, relu=True)                           # BN + CS + ReLU
        y = _dw_s1(y, wd_ref[...], rowm, colm, K, w_img)     # dw KxK stride 1
        y = _bn(y, msk)                                      # BN + CS
        y = _pw(w2_ref, y)                                   # pw2
        y = _bn(y, None, relu=True)                          # BN + ReLU
        o_ref[0:projc, :] = xp_ref[...]                      # fused concat (identity proj)
        o_ref[projc:, :] = y
    return kernel


def _make_sn_s2_kernel(K, wo):
    def kernel(xpl_ref, w1_ref, wd_ref, w2_ref, wpd_ref, wpp_ref, msk_ref,
               rowm_ref, colm_ref, o_ref):
        projc = wpd_ref.shape[0]
        msk = msk_ref[...]
        rowm, colm = rowm_ref[...], colm_ref[...]
        x_planes = [xpl_ref[s] for s in range(4)]
        # --- main branch: pw1 applied per parity plane (decimation commutes with 1x1 conv)
        y_planes = [_pw(w1_ref, xp, msk) for xp in x_planes]
        y_planes = _bn_planes(y_planes, msk, relu=True)      # BN over full dense grid
        z = _dw_s2(y_planes, wd_ref[...], rowm, colm, K, wo)  # dw KxK stride 2
        z = _bn(z, msk)
        z = _pw(w2_ref, z)
        z = _bn(z, None, relu=True)
        # --- projection branch
        p = _dw_s2(x_planes, wpd_ref[...], rowm, colm, K, wo)
        p = _bn(p)
        p = _pw(wpp_ref, p)
        p = _bn(p, None, relu=True)
        o_ref[0:projc, :] = p                                # fused concat
        o_ref[projc:, :] = z
    return kernel


def _make_sx_s1_kernel(w_img):
    K = 3

    def kernel(xm_ref, xp_ref, wd0_ref, w1_ref, wd1_ref, w2_ref, wd2_ref, w3_ref,
               msk_ref, rowm_ref, colm_ref, o_ref):
        projc = xp_ref.shape[0]
        msk = msk_ref[...]
        rowm, colm = rowm_ref[...], colm_ref[...]
        y = _dw_s1(xm_ref[...], wd0_ref[...], rowm, colm, K, w_img)
        y = _bn(y)
        y = _pw(w1_ref, y, msk); y = _bn(y, msk, relu=True)
        y = _dw_s1(y, wd1_ref[...], rowm, colm, K, w_img); y = _bn(y, msk)
        y = _pw(w2_ref, y, msk); y = _bn(y, msk, relu=True)
        y = _dw_s1(y, wd2_ref[...], rowm, colm, K, w_img); y = _bn(y, msk)
        y = _pw(w3_ref, y); y = _bn(y, None, relu=True)
        o_ref[0:projc, :] = xp_ref[...]
        o_ref[projc:, :] = y
    return kernel


def _make_sx_s2_kernel(wo):
    K = 3

    def kernel(xpl_ref, wd0_ref, w1_ref, wd1_ref, w2_ref, wd2_ref, w3_ref,
               wpd_ref, wpp_ref, msk_ref, rowm2_ref, colm2_ref, rowm1_ref, colm1_ref,
               o_ref):
        projc = wpd_ref.shape[0]
        msk = msk_ref[...]
        rowm2, colm2 = rowm2_ref[...], colm2_ref[...]
        rowm1, colm1 = rowm1_ref[...], colm1_ref[...]
        x_planes = [xpl_ref[s] for s in range(4)]
        # --- main branch
        y = _dw_s2(x_planes, wd0_ref[...], rowm2, colm2, K, wo)
        y = _bn(y)
        y = _pw(w1_ref, y, msk); y = _bn(y, msk, relu=True)
        y = _dw_s1(y, wd1_ref[...], rowm1, colm1, K, wo); y = _bn(y, msk)
        y = _pw(w2_ref, y, msk); y = _bn(y, msk, relu=True)
        y = _dw_s1(y, wd2_ref[...], rowm1, colm1, K, wo); y = _bn(y, msk)
        y = _pw(w3_ref, y); y = _bn(y, None, relu=True)
        # --- projection branch
        p = _dw_s2(x_planes, wpd_ref[...], rowm2, colm2, K, wo)
        p = _bn(p)
        p = _pw(wpp_ref, p)
        p = _bn(p, None, relu=True)
        o_ref[0:projc, :] = p
        o_ref[projc:, :] = y
    return kernel


# ---------------------------------------------------------------------------
# pallas_call wrapper (toy shapes: whole-array VMEM blocks on a trivial grid)
# ---------------------------------------------------------------------------

_COMPILER_PARAMS = pltpu.CompilerParams(dimension_semantics=("arbitrary",))


def _block_call(kernel, args, out_c, out_m):
    args = [jnp.asarray(a) for a in args]
    in_specs = [pl.BlockSpec(a.shape, lambda i, n=a.ndim: (0,) * n) for a in args]
    return pl.pallas_call(
        kernel,
        out_shape=jax.ShapeDtypeStruct((out_c, out_m), jnp.float32),
        grid=(1,),
        in_specs=in_specs,
        out_specs=pl.BlockSpec((out_c, out_m), lambda i: (0, 0)),
        compiler_params=_COMPILER_PARAMS,
    )(*args)


# ---------------------------------------------------------------------------
# layout plumbing (single transpose in / single transpose out, XLA-side)
# ---------------------------------------------------------------------------

def _split_stride1(x_nchw):
    n, c, h, w = x_nchw.shape
    assert c % 4 == 0                                   # channel_shuffle contract
    x_cnhw = jnp.transpose(x_nchw, (1, 0, 2, 3))
    x_proj = x_cnhw[0::2].reshape(c // 2, n * h * w)    # even channels (identity branch)
    x_main = x_cnhw[1::2].reshape(c // 2, n * h * w)    # odd channels  (main branch)
    return x_proj, x_main, n, h, w


def _parity_planes(x_nchw):
    """(4, C, N*Ho*Wo): plane (p, q) at index 2p+q holds x[:, :, p::2, q::2]."""
    n, c, h, w = x_nchw.shape
    assert h % 2 == 0 and w % 2 == 0
    planes = []
    for p in range(2):
        for q in range(2):
            pq = jnp.transpose(x_nchw[:, :, p::2, q::2], (1, 0, 2, 3)).reshape(c, -1)
            planes.append(pq)
    return jnp.stack(planes, axis=0), n, h, w


def _to_nchw(out_cm, n, ho, wo):
    return jnp.transpose(out_cm.reshape(-1, n, ho, wo), (1, 0, 2, 3))


# ---------------------------------------------------------------------------
# block forwards (ONE pallas_call each)
# ---------------------------------------------------------------------------

@functools.partial(jax.jit, static_argnums=(3, 4))
def shufflenet_cs_forward(x_nchw, channel_mask, params, ksize, stride):
    midc = params["pw1"].shape[0]
    mask = channel_mask[:midc].astype(jnp.float32).reshape(midc, 1)
    if stride == 1:
        x_proj, x_main, n, h, w = _split_stride1(x_nchw)
        rowm, colm = _dw_masks_s1_np(n, h, w, ksize)
        out_c = x_proj.shape[0] + params["pw2"].shape[0]
        out = _block_call(
            _make_sn_s1_kernel(ksize, w),
            [x_main, x_proj, params["pw1"], params["dw"], params["pw2"],
             mask, rowm, colm],
            out_c, n * h * w)
        return _to_nchw(out, n, h, w)
    else:
        planes, n, h, w = _parity_planes(x_nchw)
        ho, wo = h // 2, w // 2
        rowm, colm = _dw_masks_s2_np(n, h, w, ksize)
        out_c = params["proj_dw"].shape[0] + params["pw2"].shape[0]
        out = _block_call(
            _make_sn_s2_kernel(ksize, wo),
            [planes, params["pw1"], params["dw"], params["pw2"],
             params["proj_dw"], params["proj_pw"], mask, rowm, colm],
            out_c, n * ho * wo)
        return _to_nchw(out, n, ho, wo)


@functools.partial(jax.jit, static_argnums=(3,))
def shuffle_xception_cs_forward(x_nchw, channel_mask, params, stride):
    midc = params["pw1"].shape[0]
    mask = channel_mask[:midc].astype(jnp.float32).reshape(midc, 1)
    if stride == 1:
        x_proj, x_main, n, h, w = _split_stride1(x_nchw)
        rowm, colm = _dw_masks_s1_np(n, h, w, 3)
        out_c = x_proj.shape[0] + params["pw3"].shape[0]
        out = _block_call(
            _make_sx_s1_kernel(w),
            [x_main, x_proj, params["dw0"], params["pw1"], params["dw1"],
             params["pw2"], params["dw2"], params["pw3"], mask, rowm, colm],
            out_c, n * h * w)
        return _to_nchw(out, n, h, w)
    else:
        planes, n, h, w = _parity_planes(x_nchw)
        ho, wo = h // 2, w // 2
        rowm2, colm2 = _dw_masks_s2_np(n, h, w, 3)
        rowm1, colm1 = _dw_masks_s1_np(n, ho, wo, 3)
        out_c = params["proj_dw"].shape[0] + params["pw3"].shape[0]
        out = _block_call(
            _make_sx_s2_kernel(wo),
            [planes, params["dw0"], params["pw1"], params["dw1"], params["pw2"],
             params["dw2"], params["pw3"], params["proj_dw"], params["proj_pw"],
             mask, rowm2, colm2, rowm1, colm1],
            out_c, n * ho * wo)
        return _to_nchw(out, n, ho, wo)


# ---------------------------------------------------------------------------
# deterministic synthetic parameters
#   * pointwise (1x1) weights stored pre-transposed (Cout, Cin) in bf16 (MXU operands)
#   * depthwise weights stored (C, K*K) in f32 (VPU operands)
# ---------------------------------------------------------------------------

def _init_shufflenet_params(key, inc, midc, ouc, ksize, stride, projc):
    ks = jax.random.split(key, 5)
    p = {
        "pw1": (jax.random.normal(ks[0], (midc, inc), jnp.float32) * 0.1).astype(jnp.bfloat16),
        "dw":  jax.random.normal(ks[1], (midc, ksize * ksize), jnp.float32) * 0.1,
        "pw2": (jax.random.normal(ks[2], (ouc, midc), jnp.float32) * 0.1).astype(jnp.bfloat16),
    }
    if stride == 2:
        p["proj_dw"] = jax.random.normal(ks[3], (projc, ksize * ksize), jnp.float32) * 0.1
        p["proj_pw"] = (jax.random.normal(ks[4], (projc, projc), jnp.float32) * 0.1).astype(jnp.bfloat16)
    return p


def _init_xception_params(key, inc, midc, ouc, stride, projc):
    ks = jax.random.split(key, 8)
    p = {
        "dw0": jax.random.normal(ks[0], (inc, 9), jnp.float32) * 0.1,
        "pw1": (jax.random.normal(ks[1], (midc, inc), jnp.float32) * 0.1).astype(jnp.bfloat16),
        "dw1": jax.random.normal(ks[2], (midc, 9), jnp.float32) * 0.1,
        "pw2": (jax.random.normal(ks[3], (midc, midc), jnp.float32) * 0.1).astype(jnp.bfloat16),
        "dw2": jax.random.normal(ks[4], (midc, 9), jnp.float32) * 0.1,
        "pw3": (jax.random.normal(ks[5], (ouc, midc), jnp.float32) * 0.1).astype(jnp.bfloat16),
    }
    if stride == 2:
        p["proj_dw"] = jax.random.normal(ks[6], (projc, 9), jnp.float32) * 0.1
        p["proj_pw"] = (jax.random.normal(ks[7], (projc, projc), jnp.float32) * 0.1).astype(jnp.bfloat16)
    return p


class ShuffleNasBlockPallas:
    """Pallas re-implementation of ShuffleNasBlock (act_name='relu', use_se=False)."""

    def __init__(self, input_channel, output_channel, stride,
                 max_channel_scale=2.0, key=None):
        assert stride in (1, 2)
        self.stride = stride
        self.midc = make_divisible(int(output_channel // 2 * max_channel_scale))
        inc = input_channel // 2 if stride == 1 else input_channel
        projc = inc
        ouc = output_channel - projc
        key = jax.random.PRNGKey(0) if key is None else key
        k0, k1, k2, k3 = jax.random.split(key, 4)
        self.params_sn = {
            3: _init_shufflenet_params(k0, inc, self.midc, ouc, 3, stride, projc),
            5: _init_shufflenet_params(k1, inc, self.midc, ouc, 5, stride, projc),
            7: _init_shufflenet_params(k2, inc, self.midc, ouc, 7, stride, projc),
        }
        self.params_sx = _init_xception_params(k3, inc, self.midc, ouc, stride, projc)

    def __call__(self, x, block_choice, channel_mask):
        if block_choice == 0:
            return shufflenet_cs_forward(x, channel_mask, self.params_sn[3], 3, self.stride)
        if block_choice == 1:
            return shufflenet_cs_forward(x, channel_mask, self.params_sn[5], 5, self.stride)
        if block_choice == 2:
            return shufflenet_cs_forward(x, channel_mask, self.params_sn[7], 7, self.stride)
        if block_choice == 3:
            return shuffle_xception_cs_forward(x, channel_mask, self.params_sx, self.stride)
        return x


# ---------------------------------------------------------------------------
# pure-JAX (non-Pallas) reference, used only for correctness checking in main
# ---------------------------------------------------------------------------

def _ref_bn(x):
    mean = jnp.mean(x, axis=(0, 2, 3), keepdims=True)
    var = jnp.mean((x - mean) ** 2, axis=(0, 2, 3), keepdims=True)
    return (x - mean) * jax.lax.rsqrt(var + EPS)


def _ref_cs(x, channel_mask, c):
    return x * channel_mask[:c].astype(jnp.float32).reshape(1, c, 1, 1)


def _ref_pw(x, w):
    return jnp.einsum("oc,nchw->nohw", w.astype(jnp.bfloat16), x.astype(jnp.bfloat16),
                      preferred_element_type=jnp.float32)


def _ref_dw(x, w, K, stride):
    c = x.shape[1]
    pad = K // 2
    kern = w.reshape(c, 1, K, K).astype(jnp.float32)
    return jax.lax.conv_general_dilated(
        x, kern, window_strides=(stride, stride), padding=((pad, pad), (pad, pad)),
        dimension_numbers=("NCHW", "OIHW", "NCHW"), feature_group_count=c)


def _ref_shufflenet(x, channel_mask, p, K, stride):
    midc = p["pw1"].shape[0]
    if stride == 1:
        xp_, xm = x[:, 0::2], x[:, 1::2]
    else:
        xp_, xm = x, x
    y = _ref_pw(xm, p["pw1"]); y = _ref_cs(y, channel_mask, midc)
    y = _ref_bn(y); y = _ref_cs(y, channel_mask, midc); y = jnp.maximum(y, 0.0)
    y = _ref_dw(y, p["dw"], K, stride); y = _ref_bn(y); y = _ref_cs(y, channel_mask, midc)
    y = _ref_pw(y, p["pw2"]); y = _ref_bn(y); y = jnp.maximum(y, 0.0)
    if stride == 2:
        z = _ref_dw(xp_, p["proj_dw"], K, 2); z = _ref_bn(z)
        z = _ref_pw(z, p["proj_pw"]); z = _ref_bn(z); xp_ = jnp.maximum(z, 0.0)
    return jnp.concatenate([xp_, y], axis=1)


def _ref_xception(x, channel_mask, p, stride):
    midc = p["pw1"].shape[0]
    if stride == 1:
        xp_, xm = x[:, 0::2], x[:, 1::2]
    else:
        xp_, xm = x, x
    y = _ref_dw(xm, p["dw0"], 3, stride); y = _ref_bn(y)
    y = _ref_pw(y, p["pw1"]); y = _ref_cs(y, channel_mask, midc)
    y = _ref_bn(y); y = _ref_cs(y, channel_mask, midc); y = jnp.maximum(y, 0.0)
    y = _ref_dw(y, p["dw1"], 3, 1); y = _ref_bn(y); y = _ref_cs(y, channel_mask, midc)
    y = _ref_pw(y, p["pw2"]); y = _ref_cs(y, channel_mask, midc)
    y = _ref_bn(y); y = _ref_cs(y, channel_mask, midc); y = jnp.maximum(y, 0.0)
    y = _ref_dw(y, p["dw2"], 3, 1); y = _ref_bn(y); y = _ref_cs(y, channel_mask, midc)
    y = _ref_pw(y, p["pw3"]); y = _ref_bn(y); y = jnp.maximum(y, 0.0)
    if stride == 2:
        z = _ref_dw(xp_, p["proj_dw"], 3, 2); z = _ref_bn(z)
        z = _ref_pw(z, p["proj_pw"]); z = _ref_bn(z); xp_ = jnp.maximum(z, 0.0)
    return jnp.concatenate([xp_, y], axis=1)


def _reference(blk, x, block_choice, channel_mask):
    if block_choice in (0, 1, 2):
        K = (3, 5, 7)[block_choice]
        return _ref_shufflenet(x, channel_mask, blk.params_sn[K], K, blk.stride)
    return _ref_xception(x, channel_mask, blk.params_sx, blk.stride)


# ---------------------------------------------------------------------------

if __name__ == "__main__":
    key = jax.random.PRNGKey(0)
    kx, kp1, kp2 = jax.random.split(key, 3)

    N, C, H, W = 2, 16, 16, 16
    x = jax.random.normal(kx, (N, C, H, W), jnp.float32)

    # stride-1 block: channel_shuffle split + identity projection branch
    blk1 = ShuffleNasBlockPallas(C, 16, 1, key=kp1)
    mask1 = jnp.concatenate([jnp.ones((12,), jnp.float32),
                             jnp.zeros((blk1.midc - 12,), jnp.float32)])
    for choice in (0, 1, 2, 3):   # 3x3 / 5x5 / 7x7 ShuffleNetV2, 3x3 ShuffleXception
        y = jax.block_until_ready(blk1(x, choice, mask1))
        assert y.shape == (N, 16, H, W), y.shape
        assert bool(jnp.all(jnp.isfinite(y)))
        err = float(jnp.max(jnp.abs(y - _reference(blk1, x, choice, mask1))))
        assert err < 2e-2, f"stride-1 choice {choice}: max abs err {err}"

    # stride-2 block: down-sampling + learned projection branch
    blk2 = ShuffleNasBlockPallas(C, 32, 2, key=kp2)
    mask2 = jnp.concatenate([jnp.ones((24,), jnp.float32),
                             jnp.zeros((blk2.midc - 24,), jnp.float32)])
    for choice in (0, 3):
        y = jax.block_until_ready(blk2(x, choice, mask2))
        assert y.shape == (N, 32, H // 2, W // 2), y.shape
        assert bool(jnp.all(jnp.isfinite(y)))
        err = float(jnp.max(jnp.abs(y - _reference(blk2, x, choice, mask2))))
        assert err < 2e-2, f"stride-2 choice {choice}: max abs err {err}"

    print("KERNEL_OK")
</pallas_src>

<mosaic_0001>
module attributes {stable_mosaic.version = 11 : i64} {
  func.func @kernel(%arg0: i32, %arg1: memref<8x512xf32, #tpu.memory_space<vmem>>, %arg2: memref<8x512xf32, #tpu.memory_space<vmem>>, %arg3: memref<16x8xbf16, #tpu.memory_space<vmem>>, %arg4: memref<16x9xf32, #tpu.memory_space<vmem>>, %arg5: memref<8x16xbf16, #tpu.memory_space<vmem>>, %arg6: memref<16x1xf32, #tpu.memory_space<vmem>>, %arg7: memref<3x512xf32, #tpu.memory_space<vmem>>, %arg8: memref<3x512xf32, #tpu.memory_space<vmem>>, %arg9: memref<16x512xf32, #tpu.memory_space<vmem>>) attributes {dimension_semantics = [#tpu.dimension_semantics<arbitrary>], iteration_bounds = array<i64: 1>, scalar_prefetch = 0 : i64, scratch_operands = 0 : i64, tpu.core_type = #tpu.core_type<tc>, window_params = [{pipeline_mode = #tpu.pipeline_mode<synchronous>, transform_indices = @transform_0, window_bounds = array<i64: 8, 512>}, {pipeline_mode = #tpu.pipeline_mode<synchronous>, transform_indices = @transform_1, window_bounds = array<i64: 8, 512>}, {pipeline_mode = #tpu.pipeline_mode<synchronous>, transform_indices = @transform_2, window_bounds = array<i64: 16, 8>}, {pipeline_mode = #tpu.pipeline_mode<synchronous>, transform_indices = @transform_3, window_bounds = array<i64: 16, 9>}, {pipeline_mode = #tpu.pipeline_mode<synchronous>, transform_indices = @transform_4, window_bounds = array<i64: 8, 16>}, {pipeline_mode = #tpu.pipeline_mode<synchronous>, transform_indices = @transform_5, window_bounds = array<i64: 16, 1>}, {pipeline_mode = #tpu.pipeline_mode<synchronous>, transform_indices = @transform_6, window_bounds = array<i64: 3, 512>}, {pipeline_mode = #tpu.pipeline_mode<synchronous>, transform_indices = @transform_7, window_bounds = array<i64: 3, 512>}, {pipeline_mode = #tpu.pipeline_mode<synchronous>, transform_indices = @transform_8, window_bounds = array<i64: 16, 512>}]} {
    %c0 = arith.constant 0 : index
    %c0_0 = arith.constant 0 : index
    %0 = vector.load %arg6[%c0, %c0_0] : memref<16x1xf32, #tpu.memory_space<vmem>>, vector<16x1xf32>
    %c0_1 = arith.constant 0 : index
    %c0_2 = arith.constant 0 : index
    %1 = vector.load %arg7[%c0_1, %c0_2] : memref<3x512xf32, #tpu.memory_space<vmem>>, vector<3x512xf32>
    %c0_3 = arith.constant 0 : index
    %c0_4 = arith.constant 0 : index
    %2 = vector.load %arg8[%c0_3, %c0_4] : memref<3x512xf32, #tpu.memory_space<vmem>>, vector<3x512xf32>
    %c0_5 = arith.constant 0 : index
    %c0_6 = arith.constant 0 : index
    %3 = vector.load %arg1[%c0_5, %c0_6] : memref<8x512xf32, #tpu.memory_space<vmem>>, vector<8x512xf32>
    %c0_7 = arith.constant 0 : index
    %c0_8 = arith.constant 0 : index
    %4 = vector.load %arg3[%c0_7, %c0_8] : memref<16x8xbf16, #tpu.memory_space<vmem>>, vector<16x8xbf16>
    %5 = arith.truncf %3 : vector<8x512xf32> to vector<8x512xbf16>
    %cst = arith.constant dense<0.000000e+00> : vector<16x512xf32>
    %6 = tpu.matmul %4, %5, %cst {dimension_numbers = #tpu.dot_dimension_numbers<[1], [0], [0], [1], [0, 0, 1, 1], [], []>} : vector<16x8xbf16>, vector<8x512xbf16>, vector<16x512xf32> -> vector<16x512xf32>
    %7 = vector.broadcast %0 : vector<16x1xf32> to vector<16x512xf32>
    %8 = arith.mulf %6, %7 : vector<16x512xf32>
    %cst_9 = arith.constant dense<0.000000e+00> : vector<16xf32>
    %9 = vector.multi_reduction <add>, %8, %cst_9 [1] : vector<16x512xf32> to vector<16xf32>
    %10 = vector.shape_cast %9 : vector<16xf32> to vector<16x1xf32>
    %cst_10 = arith.constant 5.120000e+02 : f32
    %11 = vector.broadcast %cst_10 : f32 to vector<16x1xf32>
    %12 = arith.divf %10, %11 : vector<16x1xf32>
    %13 = vector.broadcast %12 : vector<16x1xf32> to vector<16x512xf32>
    %14 = arith.subf %8, %13 : vector<16x512xf32>
    %15 = arith.mulf %14, %14 : vector<16x512xf32>
    %cst_11 = arith.constant dense<0.000000e+00> : vector<16xf32>
    %16 = vector.multi_reduction <add>, %15, %cst_11 [1] : vector<16x512xf32> to vector<16xf32>
    %17 = vector.shape_cast %16 : vector<16xf32> to vector<16x1xf32>
    %cst_12 = arith.constant 5.120000e+02 : f32
    %18 = vector.broadcast %cst_12 : f32 to vector<16x1xf32>
    %19 = arith.divf %17, %18 : vector<16x1xf32>
    %cst_13 = arith.constant 9.99999974E-6 : f32
    %20 = vector.broadcast %cst_13 : f32 to vector<16x1xf32>
    %21 = arith.addf %19, %20 : vector<16x1xf32>
    %22 = math.rsqrt %21 : vector<16x1xf32>
    %23 = vector.broadcast %22 : vector<16x1xf32> to vector<16x512xf32>
    %24 = arith.mulf %14, %23 : vector<16x512xf32>
    %25 = vector.broadcast %0 : vector<16x1xf32> to vector<16x512xf32>
    %26 = arith.mulf %24, %25 : vector<16x512xf32>
    %cst_14 = arith.constant 0.000000e+00 : f32
    %27 = vector.broadcast %cst_14 : f32 to vector<16x512xf32>
    %28 = arith.maximumf %26, %27 : vector<16x512xf32>
    %c0_15 = arith.constant 0 : index
    %c0_16 = arith.constant 0 : index
    %29 = vector.load %arg4[%c0_15, %c0_16] : memref<16x9xf32, #tpu.memory_space<vmem>>, vector<16x9xf32>
    %c1_i32 = arith.constant 1 : i32
    %30 = tpu.dynamic_rotate %28 by %c1_i32 dim 1 : vector<16x512xf32>, i32 -> vector<16x512xf32>
    %31 = vector.extract_strided_slice %2 {offsets = [0, 0], sizes = [1, 512], strides = [1, 1]} : vector<3x512xf32> to vector<1x512xf32>
    %32 = vector.broadcast %31 : vector<1x512xf32> to vector<16x512xf32>
    %33 = arith.mulf %30, %32 : vector<16x512xf32>
    %34 = vector.extract_strided_slice %2 {offsets = [1, 0], sizes = [1, 512], strides = [1, 1]} : vector<3x512xf32> to vector<1x512xf32>
    %35 = vector.broadcast %34 : vector<1x512xf32> to vector<16x512xf32>
    %36 = arith.mulf %28, %35 : vector<16x512xf32>
    %c511_i32 = arith.constant 511 : i32
    %37 = tpu.dynamic_rotate %28 by %c511_i32 dim 1 : vector<16x512xf32>, i32 -> vector<16x512xf32>
    %38 = vector.extract_strided_slice %2 {offsets = [2, 0], sizes = [1, 512], strides = [1, 1]} : vector<3x512xf32> to vector<1x512xf32>
    %39 = vector.broadcast %38 : vector<1x512xf32> to vector<16x512xf32>
    %40 = arith.mulf %37, %39 : vector<16x512xf32>
    %cst_17 = arith.constant 0.000000e+00 : f32
    %41 = vector.broadcast %cst_17 : f32 to vector<16x512xf32>
    %42 = vector.extract_strided_slice %29 {offsets = [0, 0], sizes = [16, 1], strides = [1, 1]} : vector<16x9xf32> to vector<16x1xf32>
    %43 = vector.broadcast %42 : vector<16x1xf32> to vector<16x512xf32>
    %44 = arith.mulf %33, %43 : vector<16x512xf32>
    %45 = vector.extract_strided_slice %29 {offsets = [0, 1], sizes = [16, 1], strides = [1, 1]} : vector<16x9xf32> to vector<16x1xf32>
    %46 = vector.broadcast %45 : vector<16x1xf32> to vector<16x512xf32>
    %47 = arith.mulf %36, %46 : vector<16x512xf32>
    %48 = arith.addf %44, %47 : vector<16x512xf32>
    %49 = vector.extract_strided_slice %29 {offsets = [0, 2], sizes = [16, 1], strides = [1, 1]} : vector<16x9xf32> to vector<16x1xf32>
    %50 = vector.broadcast %49 : vector<16x1xf32> to vector<16x512xf32>
    %51 = arith.mulf %40, %50 : vector<16x512xf32>
    %52 = arith.addf %48, %51 : vector<16x512xf32>
    %c16_i32 = arith.constant 16 : i32
    %53 = tpu.dynamic_rotate %52 by %c16_i32 dim 1 : vector<16x512xf32>, i32 -> vector<16x512xf32>
    %54 = vector.extract_strided_slice %1 {offsets = [0, 0], sizes = [1, 512], strides = [1, 1]} : vector<3x512xf32> to vector<1x512xf32>
    %55 = vector.broadcast %54 : vector<1x512xf32> to vector<16x512xf32>
    %56 = arith.mulf %53, %55 : vector<16x512xf32>
    %57 = arith.addf %41, %56 : vector<16x512xf32>
    %58 = vector.extract_strided_slice %29 {offsets = [0, 3], sizes = [16, 1], strides = [1, 1]} : vector<16x9xf32> to vector<16x1xf32>
    %59 = vector.broadcast %58 : vector<16x1xf32> to vector<16x512xf32>
    %60 = arith.mulf %33, %59 : vector<16x512xf32>
    %61 = vector.extract_strided_slice %29 {offsets = [0, 4], sizes = [16, 1], strides = [1, 1]} : vector<16x9xf32> to vector<16x1xf32>
    %62 = vector.broadcast %61 : vector<16x1xf32> to vector<16x512xf32>
    %63 = arith.mulf %36, %62 : vector<16x512xf32>
    %64 = arith.addf %60, %63 : vector<16x512xf32>
    %65 = vector.extract_strided_slice %29 {offsets = [0, 5], sizes = [16, 1], strides = [1, 1]} : vector<16x9xf32> to vector<16x1xf32>
    %66 = vector.broadcast %65 : vector<16x1xf32> to vector<16x512xf32>
    %67 = arith.mulf %40, %66 : vector<16x512xf32>
    %68 = arith.addf %64, %67 : vector<16x512xf32>
    %69 = vector.extract_strided_slice %1 {offsets = [1, 0], sizes = [1, 512], strides = [1, 1]} : vector<3x512xf32> to vector<1x512xf32>
    %70 = vector.broadcast %69 : vector<1x512xf32> to vector<16x512xf32>
    %71 = arith.mulf %68, %70 : vector<16x512xf32>
    %72 = arith.addf %57, %71 : vector<16x512xf32>
    %73 = vector.extract_strided_slice %29 {offsets = [0, 6], sizes = [16, 1], strides = [1, 1]} : vector<16x9xf32> to vector<16x1xf32>
    %74 = vector.broadcast %73 : vector<16x1xf32> to vector<16x512xf32>
    %75 = arith.mulf %33, %74 : vector<16x512xf32>
    %76 = vector.extract_strided_slice %29 {offsets = [0, 7], sizes = [16, 1], strides = [1, 1]} : vector<16x9xf32> to vector<16x1xf32>
    %77 = vector.broadcast %76 : vector<16x1xf32> to vector<16x512xf32>
    %78 = arith.mulf %36, %77 : vector<16x512xf32>
    %79 = arith.addf %75, %78 : vector<16x512xf32>
    %80 = vector.extract_strided_slice %29 {offsets = [0, 8], sizes = [16, 1], strides = [1, 1]} : vector<16x9xf32> to vector<16x1xf32>
    %81 = vector.broadcast %80 : vector<16x1xf32> to vector<16x512xf32>
    %82 = arith.mulf %40, %81 : vector<16x512xf32>
    %83 = arith.addf %79, %82 : vector<16x512xf32>
    %c496_i32 = arith.constant 496 : i32
    %84 = tpu.dynamic_rotate %83 by %c496_i32 dim 1 : vector<16x512xf32>, i32 -> vector<16x512xf32>
    %85 = vector.extract_strided_slice %1 {offsets = [2, 0], sizes = [1, 512], strides = [1, 1]} : vector<3x512xf32> to vector<1x512xf32>
    %86 = vector.broadcast %85 : vector<1x512xf32> to vector<16x512xf32>
    %87 = arith.mulf %84, %86 : vector<16x512xf32>
    %88 = arith.addf %72, %87 : vector<16x512xf32>
    %cst_18 = arith.constant dense<0.000000e+00> : vector<16xf32>
    %89 = vector.multi_reduction <add>, %88, %cst_18 [1] : vector<16x512xf32> to vector<16xf32>
    %90 = vector.shape_cast %89 : vector<16xf32> to vector<16x1xf32>
    %cst_19 = arith.constant 5.120000e+02 : f32
    %91 = vector.broadcast %cst_19 : f32 to vector<16x1xf32>
    %92 = arith.divf %90, %91 : vector<16x1xf32>
    %93 = vector.broadcast %92 : vector<16x1xf32> to vector<16x512xf32>
    %94 = arith.subf %88, %93 : vector<16x512xf32>
    %95 = arith.mulf %94, %94 : vector<16x512xf32>
    %cst_20 = arith.constant dense<0.000000e+00> : vector<16xf32>
    %96 = vector.multi_reduction <add>, %95, %cst_20 [1] : vector<16x512xf32> to vector<16xf32>
    %97 = vector.shape_cast %96 : vector<16xf32> to vector<16x1xf32>
    %cst_21 = arith.constant 5.120000e+02 : f32
    %98 = vector.broadcast %cst_21 : f32 to vector<16x1xf32>
    %99 = arith.divf %97, %98 : vector<16x1xf32>
    %cst_22 = arith.constant 9.99999974E-6 : f32
    %100 = vector.broadcast %cst_22 : f32 to vector<16x1xf32>
    %101 = arith.addf %99, %100 : vector<16x1xf32>
    %102 = math.rsqrt %101 : vector<16x1xf32>
    %103 = vector.broadcast %102 : vector<16x1xf32> to vector<16x512xf32>
    %104 = arith.mulf %94, %103 : vector<16x512xf32>
    %105 = vector.broadcast %0 : vector<16x1xf32> to vector<16x512xf32>
    %106 = arith.mulf %104, %105 : vector<16x512xf32>
    %c0_23 = arith.constant 0 : index
    %c0_24 = arith.constant 0 : index
    %107 = vector.load %arg5[%c0_23, %c0_24] : memref<8x16xbf16, #tpu.memory_space<vmem>>, vector<8x16xbf16>
    %108 = arith.truncf %106 : vector<16x512xf32> to vector<16x512xbf16>
    %cst_25 = arith.constant dense<0.000000e+00> : vector<8x512xf32>
    %109 = tpu.matmul %107, %108, %cst_25 {dimension_numbers = #tpu.dot_dimension_numbers<[1], [0], [0], [1], [0, 0, 1, 1], [], []>} : vector<8x16xbf16>, vector<16x512xbf16>, vector<8x512xf32> -> vector<8x512xf32>
    %cst_26 = arith.constant dense<0.000000e+00> : vector<8xf32>
    %110 = vector.multi_reduction <add>, %109, %cst_26 [1] : vector<8x512xf32> to vector<8xf32>
    %111 = vector.shape_cast %110 : vector<8xf32> to vector<8x1xf32>
    %cst_27 = arith.constant 5.120000e+02 : f32
    %112 = vector.broadcast %cst_27 : f32 to vector<8x1xf32>
    %113 = arith.divf %111, %112 : vector<8x1xf32>
    %114 = vector.broadcast %113 : vector<8x1xf32> to vector<8x512xf32>
    %115 = arith.subf %109, %114 : vector<8x512xf32>
    %116 = arith.mulf %115, %115 : vector<8x512xf32>
    %cst_28 = arith.constant dense<0.000000e+00> : vector<8xf32>
    %117 = vector.multi_reduction <add>, %116, %cst_28 [1] : vector<8x512xf32> to vector<8xf32>
    %118 = vector.shape_cast %117 : vector<8xf32> to vector<8x1xf32>
    %cst_29 = arith.constant 5.120000e+02 : f32
    %119 = vector.broadcast %cst_29 : f32 to vector<8x1xf32>
    %120 = arith.divf %118, %119 : vector<8x1xf32>
    %cst_30 = arith.constant 9.99999974E-6 : f32
    %121 = vector.broadcast %cst_30 : f32 to vector<8x1xf32>
    %122 = arith.addf %120, %121 : vector<8x1xf32>
    %123 = math.rsqrt %122 : vector<8x1xf32>
    %124 = vector.broadcast %123 : vector<8x1xf32> to vector<8x512xf32>
    %125 = arith.mulf %115, %124 : vector<8x512xf32>
    %cst_31 = arith.constant 0.000000e+00 : f32
    %126 = vector.broadcast %cst_31 : f32 to vector<8x512xf32>
    %127 = arith.maximumf %125, %126 : vector<8x512xf32>
    %c0_32 = arith.constant 0 : index
    %c0_33 = arith.constant 0 : index
    %128 = vector.load %arg2[%c0_32, %c0_33] : memref<8x512xf32, #tpu.memory_space<vmem>>, vector<8x512xf32>
    %c0_34 = arith.constant 0 : index
    %c0_35 = arith.constant 0 : index
    %129 = vector.load %arg9[%c0_34, %c0_35] : memref<16x512xf32, #tpu.memory_space<vmem>>, vector<8x512xf32>
    tpu.vector_store %arg9[%c0_34, %c0_35], %128 {strides = array<i32>} : memref<16x512xf32, #tpu.memory_space<vmem>>, vector<8x512xf32>,
    %c8 = arith.constant 8 : index
    %c0_36 = arith.constant 0 : index
    %130 = vector.load %arg9[%c8, %c0_36] : memref<16x512xf32, #tpu.memory_space<vmem>>, vector<8x512xf32>
    tpu.vector_store %arg9[%c8, %c0_36], %127 {strides = array<i32>} : memref<16x512xf32, #tpu.memory_space<vmem>>, vector<8x512xf32>,
    return
  }
  func.func @transform_0(%arg0: i32) -> (i32, i32) {
    %c0_i32 = arith.constant 0 : i32
    %c0_i32_0 = arith.constant 0 : i32
    %c0_i32_1 = arith.constant 0 : i32
    return %c0_i32, %c0_i32_0 : i32, i32
  }
  func.func @transform_1(%arg0: i32) -> (i32, i32) {
    %c0_i32 = arith.constant 0 : i32
    %c0_i32_0 = arith.constant 0 : i32
    %c0_i32_1 = arith.constant 0 : i32
    return %c0_i32, %c0_i32_0 : i32, i32
  }
  func.func @transform_2(%arg0: i32) -> (i32, i32) {
    %c0_i32 = arith.constant 0 : i32
    %c0_i32_0 = arith.constant 0 : i32
    %c0_i32_1 = arith.constant 0 : i32
    return %c0_i32, %c0_i32_0 : i32, i32
  }
  func.func @transform_3(%arg0: i32) -> (i32, i32) {
    %c0_i32 = arith.constant 0 : i32
    %c0_i32_0 = arith.constant 0 : i32
    %c0_i32_1 = arith.constant 0 : i32
    return %c0_i32, %c0_i32_0 : i32, i32
  }
  func.func @transform_4(%arg0: i32) -> (i32, i32) {
    %c0_i32 = arith.constant 0 : i32
    %c0_i32_0 = arith.constant 0 : i32
    %c0_i32_1 = arith.constant 0 : i32
    return %c0_i32, %c0_i32_0 : i32, i32
  }
  func.func @transform_5(%arg0: i32) -> (i32, i32) {
    %c0_i32 = arith.constant 0 : i32
    %c0_i32_0 = arith.constant 0 : i32
    %c0_i32_1 = arith.constant 0 : i32
    return %c0_i32, %c0_i32_0 : i32, i32
  }
  func.func @transform_6(%arg0: i32) -> (i32, i32) {
    %c0_i32 = arith.constant 0 : i32
    %c0_i32_0 = arith.constant 0 : i32
    %c0_i32_1 = arith.constant 0 : i32
    return %c0_i32, %c0_i32_0 : i32, i32
  }
  func.func @transform_7(%arg0: i32) -> (i32, i32) {
    %c0_i32 = arith.constant 0 : i32
    %c0_i32_0 = arith.constant 0 : i32
    %c0_i32_1 = arith.constant 0 : i32
    return %c0_i32, %c0_i32_0 : i32, i32
  }
  func.func @transform_8(%arg0: i32) -> (i32, i32) {
    %c0_i32 = arith.constant 0 : i32
    %c0_i32_0 = arith.constant 0 : i32
    %c0_i32_1 = arith.constant 0 : i32
    return %c0_i32, %c0_i32_0 : i32, i32
  }
}

</mosaic_0001>

<bundles_post_ra>
// kernel: shufflenet_cs_forward.1
= control target key start
LH: loop header
LB: loop body
LE: loop exit
PB: predicated region body
PF: predicated region fallthrough
CT: control target
= control target key end

     0   :  { %vm55_vm0 = vcmask 1043456   ;;  %v1075_v3 = vmov 0   ;;  %vm51_vm1 = vcmask 64512   ;;  %v1076_v40 = vmov 1   ;;  %s1082_s20 = smov 127   ;;  %s1087_s25 = smov 112   ;;  %s1725_s0 = inlined_call_operand.vmem [shape: f32[8,512], index: 0, kind: input, shape index: {}]   ;;  %s1726_s5 = inlined_call_operand.vmem [shape: f32[16,1], index: 5, kind: input, shape index: {}]   ;;  %s1727_s2 = inlined_call_operand.vmem [shape: bf16[16,8], index: 2, kind: input, shape index: {}]   ;;  %s1728_s3 = inlined_call_operand.vmem [shape: f32[16,9], index: 3, kind: input, shape index: {}]   ;;  %s1729_s7 = inlined_call_operand.vmem [shape: f32[3,512], index: 7, kind: input, shape index: {}]   ;;  %s1730_s6 = inlined_call_operand.vmem [shape: f32[3,512], index: 6, kind: input, shape index: {}]   ;;  %s1731_s4 = inlined_call_operand.vmem [shape: bf16[8,16], index: 4, kind: input, shape index: {}]   ;;  %s1732_s1 = inlined_call_operand.vmem [shape: f32[8,512], index: 1, kind: input, shape index: {}]   ;;  %s1733_s8 = inlined_call_operand.vmem [shape: f32[16,512], index: 8, kind: output, shape index: {}]  }
   0x1   :  { %v37_v0 = vld [vmem:[%s1725_s0 + $0x8] sm:$0xff]  ;;  %v39_v1 = vld [vmem:[%s1725_s0 + $0x18] sm:$0xff]  ;;  %v36_v2 = vld [vmem:[%s1725_s0] sm:$0xff]  ;;  %100 = vmatprep.mubr.bf16.mxu0 %v1075_v3  ;;  %143 = vmatprep.mubr.bf16.mxu1 %v1075_v3  ;;  %v1077_v41 = vmov 2   ;;  %vm896_vm6 = vcmask 130048  }
   0x2   :  { %v43_v4 = vpack.c.bf16 %v37_v0, %v37_v0  ;;  %v45_v5 = vpack.c.bf16 %v39_v1, %v39_v1  ;;  %v42_v6 = vpack.c.bf16 %v36_v2, %v36_v2  ;;  %v38_v7 = vld [vmem:[%s1725_s0 + $0x10] sm:$0xff]  ;;  %1048 = vset.pattern.permute.xlu0 %v1075_v3  ;;  %1049 = vset.pattern.permute.xlu1 %v1075_v3  ;;  %v30_v9 = vld [vmem:[%s1726_s5] sm:$0xff]  ;;  %v31_v13 = vld [vmem:[%s1726_s5 + $0x8] sm:$0xff] }
   0x3   :  { %v44_v8 = vpack.c.bf16 %v38_v7, %v38_v7  ;;  %v1064_v11 = vld [vmem:[%s1727_s2] sm:$0xff]   ;;  %156 = vperm.xlu0 %1048, %v30_v9   ;;  %v1179_v39 = vld [vmem:[%s1728_s3 + $0x8] sm:$0xff] }
   0x4   :  { %1029 = vmatprep.subr.msk.bf16.mxu0 %vm55_vm0, %v43_v4  ;;  %1031 = vmatprep.subr.msk.bf16.mxu1 %vm55_vm0, %v45_v5  ;;  %v57_v10 = vsel %vm55_vm0, %v42_v6, 0  ;;  %v1173_v38 = vld [vmem:[%s1728_s3] sm:$0xff]  ;;  %v1078_v4 = vmov 6   ;;  %v1079_v5 = vmov 7   ;;  %v1080_v6 = vmov 8   ;;  %s1081_s3 = smov 1  }
   0x5   :  { %83 = vmatpush1.bf16.msra.mxu0 %v57_v10  ;;  %v63_v12 = vsel %vm55_vm0, %v44_v8, 0 }
   0x6   :  { %126 = vmatpush1.bf16.msra.mxu1 %v63_v12 }
   0x7   :  { %161 = vperm.xlu0 %1048, %v31_v13  }
   0x8   :  { %1030 = vmatmul.mubr.msk.bf16.vlgmr.msra.gmra.mxu0 %vm51_vm1, %v1064_v11 }
   0x9   :  { %1032 = vmatmul.mubr.msk.bf16.vlgmr.msra.gmra.mxu1 %vm51_vm1, %v1064_v11  ;;  %932 = vmatprep.mubr.bf16.mxu0 %v1075_v3 }
   0xa   :  { %973 = vmatprep.mubr.bf16.mxu1 %v1075_v3 }
   0xb   :  { %1051 = vset.pattern.permute.xlu0 %v1077_v41 }
  0x7e   :  { %v1158_v14 = vpop.permute.xlu0 %156 }
  0x82   :  { %v1163_v25 = vpop.permute.xlu0 %161 }
  0x83   :  { %1736 = vst [vmem:[#allocation2_spill] sm:$0xff] %v1163_v25 }
  0xc8   :  { %v102_v15 = vpop.f32.mrf.mxu0 }
  0xc9   :  { %v145_v16 = vpop.f32.mrf.mxu1  ;;  %v164_v18 = vmul.f32 %v1158_v14, %v102_v15 }
  0xca   :  { %v104_v17 = vpop.f32.mrf.mxu0  ;;  %v166_v22 = vmul.f32 %v1158_v14, %v145_v16 }
  0xcb   :  { %v165_v19 = vmul.f32 %v1158_v14, %v104_v17  ;;  %v147_v20 = vpop.f32.mrf.mxu1 }
  0xcc   :  { %v106_v21 = vpop.f32.mrf.mxu0  ;;  %v167_v27 = vmul.f32 %v1158_v14, %v147_v20 }
  0xcd   :  { %v172_v23 = vadd.f32 %v165_v19, %v164_v18  ;;  %v149_v24 = vpop.f32.mrf.mxu1  ;;  %v168_v28 = vmul.f32 %v1163_v25, %v106_v21 }
  0xce   :  { %v108_v26 = vpop.f32.mrf.mxu0  ;;  %v170_v32 = vmul.f32 %v1163_v25, %v149_v24 }
  0xcf   :  { %v169_v29 = vmul.f32 %v1163_v25, %v108_v26  ;;  %v173_v30 = vadd.f32 %v172_v23, %v166_v22  ;;  %v151_v31 = vpop.f32.mrf.mxu1 }
  0xd0   :  { %v171_v35 = vmul.f32 %v1163_v25, %v151_v31 }
  0xd1   :  { %v177_v33 = vadd.f32 %v169_v29, %v168_v28  ;;  %v174_v34 = vadd.f32 %v173_v30, %v167_v27 }
  0xd3   :  { %175 = vadd.xlane.f32.xlu1 %v174_v34  ;;  %v178_v36 = vadd.f32 %v177_v33, %v170_v32 }
  0xd5   :  { %v179_v37 = vadd.f32 %v178_v36, %v171_v35 }
  0xd7   :  { %180 = vadd.xlane.f32.xlu1 %v179_v37 }
  0xe8   :  { %431 = vperm.xlu1 %1049, %v1173_v38  }
  0xec   :  { %436 = vperm.xlu1 %1049, %v1179_v39  }
  0xf0   :  { %1050 = vset.pattern.permute.xlu1 %v1076_v40 }
  0xf1   :  { %448 = vperm.xlu1 %1050, %v1173_v38  }
 0x15c   :  { %v176_v42 = vpop.xlane.xlu1 %175 }
 0x15d   :  { %v183_v43 = vmul.f32 0.001953125, %v176_v42 }
 0x15f   :  { %v185_v44 = vsub.f32 %v164_v18, %v183_v43  ;;  %v186_v45 = vsub.f32 %v165_v19, %v183_v43  ;;  %v187_v46 = vsub.f32 %v166_v22, %v183_v43  ;;  %v188_v48 = vsub.f32 %v167_v27, %v183_v43 }
 0x160   :  { %v181_v47 = vpop.xlane.xlu1 %180 }
 0x161   :  { %v184_v49 = vmul.f32 0.001953125, %v181_v47  ;;  %v193_v50 = vmul.f32 %v185_v44, %v185_v44  ;;  %v194_v51 = vmul.f32 %v186_v45, %v186_v45  ;;  %v195_v52 = vmul.f32 %v187_v46, %v187_v46 }
 0x162   :  { %v196_v57 = vmul.f32 %v188_v48, %v188_v48  ;;  %v1084_v47 = vmov 5  }
 0x163   :  { %v189_v53 = vsub.f32 %v168_v28, %v184_v49  ;;  %v190_v54 = vsub.f32 %v169_v29, %v184_v49  ;;  %v201_v55 = vadd.f32 %v194_v51, %v193_v50  ;;  %v1183_v56 = vsub.f32 %v170_v32, %v184_v49 }
 0x164   :  { %v1185_v59 = vsub.f32 %v171_v35, %v184_v49  ;;  %v1200_v7 = vpop.permute.xlu1 %431 }
 0x165   :  { %v202_v58 = vadd.f32 %v201_v55, %v195_v52  ;;  %v197_v60 = vmul.f32 %v189_v53, %v189_v53  ;;  %v198_v61 = vmul.f32 %v190_v54, %v190_v54  ;;  %v199_v63 = vmul.f32 %v1183_v56, %v1183_v56 }
 0x166   :  { %v200_v1 = vmul.f32 %v1185_v59, %v1185_v59 }
 0x167   :  { %v203_v62 = vadd.f32 %v202_v58, %v196_v57  ;;  %v206_v0 = vadd.f32 %v198_v61, %v197_v60 }
 0x168   :  { %v1202_v8 = vpop.permute.xlu1 %436 }
 0x169   :  { %204 = vadd.xlane.f32.xlu0 %v203_v62  ;;  %v207_v2 = vadd.f32 %v206_v0, %v199_v63 }
 0x16b   :  { %v208_v3 = vadd.f32 %v207_v2, %v200_v1 }
 0x16c   :  { %v1204_v9 = vpop.permute.xlu1 %448 }
 0x16d   :  { %209 = vadd.xlane.f32.xlu1 %v208_v3 }
 0x17e   :  { %452 = vperm.xlu1 %1050, %v1179_v39  }
 0x17f   :  { %472 = vperm.xlu0 %1051, %v1173_v38  }
 0x182   :  { %1052 = vset.pattern.permute.xlu1 %v1077_v41 }
 0x183   :  { %476 = vperm.xlu1 %1052, %v1179_v39   ;;  %1054 = vset.pattern.permute.xlu0 %v1078_v4 }
 0x184   :  { %695 = vperm.xlu0 %1054, %v1179_v39  }
 0x187   :  { %1053 = vset.pattern.permute.xlu1 %v1078_v4 }
 0x188   :  { %691 = vperm.xlu1 %1053, %v1173_v38   ;;  %1056 = vset.pattern.permute.xlu0 %v1080_v6 }
 0x18c   :  { %1055 = vset.pattern.permute.xlu1 %v1079_v5 }
 0x18d   :  { %707 = vperm.xlu1 %1055, %v1173_v38  }
 0x191   :  { %711 = vperm.xlu1 %1055, %v1179_v39  }
 0x195   :  { %1057 = vset.pattern.permute.xlu1 %v1080_v6 }
 0x1f2   :  { %v205_v10 = vpop.xlane.xlu0 %204 }
 0x1f3   :  { %v211_v11 = vmul.f32 0.001953125, %v205_v10 }
 0x1f5   :  { %v213_v12 = vadd.f32 1e-05, %v211_v11 }
 0x1f6   :  { %v210_v13 = vpop.xlane.xlu1 %209 }
 0x1f7   :  { %1065 = vrsqrt.f32 %v213_v12  ;;  %v212_v15 = vmul.f32 0.001953125, %v210_v13 }
 0x1f9   :  { %v214_v16 = vadd.f32 1e-05, %v212_v15 }
 0x1fa   :  { %v1257_v49 = vpop.permute.xlu1 %452  ;;  %v1263_v52 = vpop.permute.xlu0 %472 }
 0x1fb   :  { %1067 = vrsqrt.f32 %v214_v16  ;;  %v35_v16 = vld [vmem:[%s1729_s7 + $0x8] sm:$0x77] }
 0x1fe   :  { %v1259_v50 = vpop.permute.xlu1 %476 }
 0x203   :  { %v1261_v51 = vpop.permute.xlu1 %691 }
 0x204   :  { %v1066_v17 = vpop.eup %1065 }
 0x205   :  { %v217_v18 = vmul.f32 %v1066_v17, %v185_v44  ;;  %v218_v19 = vmul.f32 %v1066_v17, %v186_v45  ;;  %v220_v20 = vmul.f32 %v1066_v17, %v188_v48  ;;  %v219_v21 = vmul.f32 %v1066_v17, %v187_v46 }
 0x206   :  { %v1083_v46 = vmov 3   ;;  %v1085_v48 = vmov 4  }
 0x207   :  { %v225_v22 = vmul.f32 %v217_v18, %v1158_v14  ;;  %v226_v23 = vmul.f32 %v218_v19, %v1158_v14  ;;  %v228_v28 = vmul.f32 %v220_v20, %v1158_v14  ;;  %v227_v29 = vmul.f32 %v219_v21, %v1158_v14 }
 0x208   :  { %v1068_v24 = vpop.eup %1067 }
 0x209   :  { %v1208_v26 = vmax.f32 %v225_v22, 0.0  ;;  %v1210_v27 = vmax.f32 %v226_v23, 0.0  ;;  %v221_v30 = vmul.f32 %v1068_v24, %v189_v53  ;;  %v1216_v31 = vmax.f32 %v228_v28, 0.0 }
 0x20a   :  { %v1218_v32 = vmax.f32 %v227_v29, 0.0  ;;  %v222_v34 = vmul.f32 %v1068_v24, %v190_v54  ;;  %v223_v37 = vmul.f32 %v1068_v24, %v1183_v56  ;;  %v224_v42 = vmul.f32 %v1068_v24, %v1185_v59  ;;  %v1265_v54 = vpop.permute.xlu1 %707  ;;  %v1267_v56 = vpop.permute.xlu0 %695 }
 0x20b   :  { %243 = vrot.lane.b32.xlu0 %v1208_v26, %s1081_s3  ;;  %247 = vrot.lane.b32.xlu1 %v1210_v27, %s1081_s3  ;;  %v229_v33 = vmul.f32 %v221_v30, %v1163_v25  ;;  %v259_v53 = vlaneseq }
 0x20c   :  { %v230_v36 = vmul.f32 %v222_v34, %v1163_v25  ;;  %v231_v41 = vmul.f32 %v223_v37, %v1163_v25  ;;  %v232_v44 = vmul.f32 %v224_v42, %v1163_v25 }
 0x20d   :  { %v1223_v35 = vmax.f32 %v229_v33, 0.0  ;;  %v273_v55 = vshrl.u32 %v259_v53, 7  ;;  %v1278_v60 = vand.u32 127, %v259_v53 }
 0x20e   :  { %v1229_v40 = vmax.f32 %v230_v36, 0.0  ;;  %v1235_v43 = vmax.f32 %v231_v41, 0.0  ;;  %v1240_v45 = vmax.f32 %v232_v44, 0.0 }
 0x20f   :  { %255 = vrot.lane.b32.xlu0 %v1216_v31, %s1081_s3  ;;  %251 = vrot.lane.b32.xlu1 %v1218_v32, %s1081_s3  ;;  %v1271_v57 = vsub.s32 1, %v273_v55  ;;  %v1276_v58 = vsub.s32 0, %v273_v55  ;;  %v1282_v0 = vsub.s32 4, %v273_v55  ;;  %v1284_v1 = vsub.s32 2, %v273_v55 }
 0x210   :  { %v1286_v2 = vsub.s32 5, %v273_v55  ;;  %vm261_vm2 = vcmp.lt.s32.totalorder %v1278_v60, 1  ;;  %v1299_v13 = vsub.s32 6, %v273_v55  ;;  %vm376_vm3 = vcmp.lt.s32.totalorder %v1278_v60, 127 }
 0x211   :  { %v287_v22 = vrot.slane %v35_v16, %v1282_v0  ;;  %v283_v33 = vrot.slane %v35_v16, %v1276_v58  ;;  %vm511_vm4 = vcmp.lt.s32.totalorder %v1278_v60, 16  ;;  %vm770_vm5 = vcmp.lt.s32.totalorder %v1278_v60, 112 }
 0x212   :  { %v400_v53 = vrot.slane %v35_v16, %v1299_v13 }
 0x213   :  { %360 = vrot.lane.b32.xlu0 %v1208_v26, %s1082_s20  ;;  %245 = vrot.lane.b32.xlu1 %v1223_v35, %s1081_s3  ;;  %v1334_v41 = vrot.slane %v287_v22, %v1276_v58 }
 0x217   :  { %364 = vrot.lane.b32.xlu0 %v1210_v27, %s1082_s20  ;;  %249 = vrot.lane.b32.xlu1 %v1229_v40, %s1081_s3 }
 0x21b   :  { %368 = vrot.lane.b32.xlu0 %v1218_v32, %s1082_s20  ;;  %253 = vrot.lane.b32.xlu1 %v1235_v43, %s1081_s3 }
 0x21f   :  { %372 = vrot.lane.b32.xlu0 %v1216_v31, %s1082_s20  ;;  %257 = vrot.lane.b32.xlu1 %v1240_v45, %s1081_s3 }
 0x223   :  { %731 = vperm.xlu0 %1056, %v1173_v38   ;;  %362 = vrot.lane.b32.xlu1 %v1223_v35, %s1082_s20 }
 0x227   :  { %1059 = vset.pattern.permute.xlu0 %v1083_v46  ;;  %366 = vrot.lane.b32.xlu1 %v1229_v40, %s1082_s20 }
 0x228   :  { %579 = vperm.xlu0 %1059, %v1179_v39  }
 0x22b   :  { %370 = vrot.lane.b32.xlu1 %v1235_v43, %s1082_s20 }
 0x22c   :  { %1061 = vset.pattern.permute.xlu0 %v1084_v47 }
 0x22d   :  { %615 = vperm.xlu0 %1061, %v1173_v38  }
 0x22f   :  { %374 = vrot.lane.b32.xlu1 %v1240_v45, %s1082_s20 }
 0x231   :  { %1063 = vset.pattern.permute.xlu0 %v1080_v6 }
 0x233   :  { %735 = vperm.xlu1 %1057, %v1179_v39  }
 0x237   :  { %1058 = vset.pattern.permute.xlu1 %v1083_v46 }
 0x238   :  { %575 = vperm.xlu1 %1058, %v1173_v38  }
 0x23c   :  { %1060 = vset.pattern.permute.xlu1 %v1085_v48 }
 0x23d   :  { %591 = vperm.xlu1 %1060, %v1173_v38   ;;  %v1269_v38 = vpop.permute.xlu1 %711 }
 0x241   :  { %595 = vperm.xlu1 %1060, %v1179_v39  }
 0x245   :  { %1062 = vset.pattern.permute.xlu1 %v1084_v47 }
 0x246   :  { %619 = vperm.xlu1 %1062, %v1179_v39   ;;  %v34_v39 = vld [vmem:[%s1729_s7] sm:$0x77]  ;;  %s1086_s7 = smov 16  }
 0x247   :  { %v275_v62 = vrot.slane %v34_v39, %v1276_v58  ;;  %v319_v63 = vrot.slane %v34_v39, %v1271_v57  ;;  %v279_v10 = vrot.slane %v34_v39, %v1282_v0  ;;  %v388_v12 = vrot.slane %v34_v39, %v1284_v1 }
 0x248   :  { %v323_v15 = vrot.slane %v34_v39, %v1286_v2  ;;  %v392_v28 = vrot.slane %v34_v39, %v1299_v13 }
 0x249   :  { %v1290_v3 = vrot.slane %v275_v62, %v1276_v58  ;;  %v1293_v6 = vrot.slane %v319_v63, %v1271_v57  ;;  %v1313_v21 = vrot.slane %v279_v10, %v1276_v58  ;;  %v1320_v24 = vrot.slane %v388_v12, %v1284_v1 }
 0x24a   :  { %v343_v29 = vrot.slane %v323_v15, %v1271_v57  ;;  %v1346_v48 = vrot.slane %v392_v28, %v1284_v1  ;;  %v396_v62 = vrot.slane %v35_v16, %v1284_v1  ;;  %v1356_v63 = vrot.slane %v283_v33, %v1276_v58 }
 0x24b   :  { %v1310_v20 = vmul.f32 %v1293_v6, %v1208_v26  ;;  %v331_v26 = vrot.slane %v35_v16, %v1286_v2  ;;  %v1375_v28 = vrot.slane %v400_v53, %v1284_v1 }
 0x24c   :  { %v1350_v55 = vmul.f32 %v343_v29, %v1210_v27 }
 0x24d   :  { %v455_v44 = vmul.f32 %v1204_v9, %v1310_v20  ;;  %v351_v39 = vrot.slane %v331_v26, %v1271_v57 }
 0x27d   :  { %v244_v59 = vpop.permute.xlu0 %243  ;;  %v248_v61 = vpop.permute.xlu1 %247 }
 0x27e   :  { %v266_v23 = vsel %vm261_vm2, %v244_v59, %v248_v61 }
 0x27f   :  { %v1331_v37 = vmul.f32 %v1313_v21, %v266_v23 }
 0x281   :  { %v256_v4 = vpop.permute.xlu0 %255  ;;  %v252_v5 = vpop.permute.xlu1 %251  ;;  %v440_v27 = vmul.f32 %v1200_v7, %v1331_v37 }
 0x282   :  { %v268_v11 = vsel %vm261_vm2, %v256_v4, %v244_v59  ;;  %v262_v46 = vsel %vm261_vm2, %v252_v5, %v256_v4  ;;  %v327_v59 = vrot.slane %v35_v16, %v1271_v57  ;;  %v264_v15 = vsel %vm261_vm2, %v248_v61, %v252_v5 }
 0x283   :  { %v1306_v17 = vmul.f32 %v1290_v3, %v268_v11  ;;  %v1367_v22 = vmul.f32 %v1334_v41, %v262_v46  ;;  %v1384_v61 = vrot.slane %v396_v62, %v1284_v1  ;;  %v456_v5 = vmul.f32 %v1204_v9, %v1350_v55 }
 0x284   :  { %v1381_v33 = vrot.slane %v327_v59, %v1271_v57 }
 0x285   :  { %v361_v18 = vpop.permute.xlu0 %360  ;;  %v246_v19 = vpop.permute.xlu1 %245  ;;  %v439_v30 = vmul.f32 %v1200_v7, %v1306_v17  ;;  %v442_v46 = vmul.f32 %v1200_v7, %v1367_v22  ;;  %v464_v62 = vadd.f32 %v456_v5, %v440_v27 }
 0x287   :  { %v463_v11 = vadd.f32 %v455_v44, %v439_v30  ;;  %v1378_v30 = vmul.f32 %v351_v39, %v1216_v31 }
 0x289   :  { %v365_v34 = vpop.permute.xlu0 %364  ;;  %v1328_v36 = vpop.permute.xlu1 %249 }
 0x28a   :  { %v381_v42 = vsel %vm376_vm3, %v361_v18, %v365_v34 }
 0x28b   :  { %v1343_v47 = vmul.f32 %v1320_v24, %v381_v42 }
 0x28d   :  { %v369_v4 = vpop.permute.xlu0 %368  ;;  %v1358_v10 = vpop.permute.xlu1 %253  ;;  %v479_v12 = vmul.f32 %v1263_v52, %v1343_v47 }
 0x28e   :  { %v379_v16 = vsel %vm376_vm3, %v365_v34, %v369_v4  ;;  %v1389_v34 = vmul.f32 %v1356_v63, %v264_v15  ;;  %v1407_v15 = vmul.f32 %v1381_v33, %v1218_v32 }
 0x28f   :  { %v1372_v23 = vmul.f32 %v1346_v48, %v379_v16  ;;  %v487_v26 = vadd.f32 %v479_v12, %v463_v11 }
 0x290   :  { %v441_v5 = vmul.f32 %v1200_v7, %v1389_v34  ;;  %v457_v7 = vmul.f32 %v1204_v9, %v1407_v15 }
 0x291   :  { %v373_v42 = vpop.permute.xlu0 %372  ;;  %495 = vrot.lane.b32.xlu1 %v487_v26, %s1086_s7  ;;  %v258_v44 = vpop.permute.xlu1 %257  ;;  %v480_v31 = vmul.f32 %v1263_v52, %v1372_v23 }
 0x292   :  { %v377_v53 = vsel %vm376_vm3, %v369_v4, %v373_v42  ;;  %v383_v59 = vsel %vm376_vm3, %v373_v42, %v361_v18  ;;  %v269_v12 = vsel %vm261_vm2, %v258_v44, %v246_v19  ;;  %v458_v4 = vmul.f32 %v1204_v9, %v1378_v30 }
 0x293   :  { %v1401_v11 = vmul.f32 %v1375_v28, %v383_v59  ;;  %v1410_v16 = vmul.f32 %v1384_v61, %v377_v53  ;;  %v488_v26 = vadd.f32 %v480_v31, %v464_v62  ;;  %v267_v18 = vsel %vm261_vm2, %v246_v19, %v1328_v36 }
 0x294   :  { %v1420_v42 = vmul.f32 %v1290_v3, %v269_v12  ;;  %v466_v32 = vadd.f32 %v458_v4, %v442_v46  ;;  %v1427_v53 = vmul.f32 %v1293_v6, %v1223_v35  ;;  %v1430_v59 = vmul.f32 %v1313_v21, %v267_v18 }
 0x295   :  { %v363_v27 = vpop.permute.xlu1 %362  ;;  %499 = vrot.lane.b32.xlu1 %v488_v26, %s1086_s7  ;;  %v482_v31 = vmul.f32 %v1263_v52, %v1401_v11  ;;  %v481_v3 = vmul.f32 %v1263_v52, %v1410_v16  ;;  %v1437_v62 = vmul.f32 %v343_v29, %v1229_v40  ;;  %v263_v12 = vsel %vm261_vm2, %v1358_v10, %v258_v44 }
 0x296   :  { %v443_v35 = vmul.f32 %v1202_v8, %v1420_v42  ;;  %v465_v9 = vadd.f32 %v457_v7, %v441_v5  ;;  %v698_v52 = vmul.f32 %v1261_v51, %v1306_v17  ;;  %v444_v21 = vmul.f32 %v1202_v8, %v1430_v59 }
 0x297   :  { %v490_v19 = vadd.f32 %v482_v31, %v466_v32  ;;  %v459_v44 = vmul.f32 %v1257_v49, %v1427_v53  ;;  %v714_v26 = vmul.f32 %v1265_v54, %v1310_v20  ;;  %v1459_v4 = vmul.f32 %v351_v39, %v1240_v45 }
 0x298   :  { %v489_v29 = vadd.f32 %v481_v3, %v465_v9  ;;  %v1462_v18 = vmul.f32 %v1334_v41, %v263_v12  ;;  %v699_v32 = vmul.f32 %v1261_v51, %v1331_v37  ;;  %v460_v45 = vmul.f32 %v1257_v49, %v1437_v62 }
 0x299   :  { %v367_v46 = vpop.permute.xlu1 %366  ;;  %507 = vrot.lane.b32.xlu1 %v490_v19, %s1086_s7  ;;  %v467_v7 = vadd.f32 %v459_v44, %v443_v35  ;;  %v265_v41 = vsel %vm261_vm2, %v1328_v36, %v1358_v10  ;;  %v722_v12 = vadd.f32 %v714_v26, %v698_v52  ;;  %v700_v26 = vmul.f32 %v1261_v51, %v1389_v34 }
 0x29a   :  { %v382_v6 = vsel %vm376_vm3, %v363_v27, %v367_v46  ;;  %v468_v9 = vadd.f32 %v460_v45, %v444_v21  ;;  %v446_v35 = vmul.f32 %v1202_v8, %v1462_v18  ;;  %v462_v21 = vmul.f32 %v1257_v49, %v1459_v4 }
 0x29b   :  { %v1450_v40 = vmul.f32 %v1320_v24, %v382_v6  ;;  %v715_v6 = vmul.f32 %v1265_v54, %v1350_v55 }
 0x29d   :  { %v371_v5 = vpop.permute.xlu1 %370  ;;  %v483_v24 = vmul.f32 %v1259_v50, %v1450_v40  ;;  %503 = vrot.lane.b32.xlu1 %v489_v29, %s1086_s7 }
 0x29e   :  { %v380_v31 = vsel %vm376_vm3, %v367_v46, %v371_v5  ;;  %v732_v19 = vpop.permute.xlu0 %731 }
 0x29f   :  { %v1478_v39 = vmul.f32 %v1346_v48, %v380_v31  ;;  %v738_v3 = vmul.f32 %v732_v19, %v1343_v47  ;;  %v491_v46 = vadd.f32 %v483_v24, %v467_v7  ;;  %v739_v29 = vmul.f32 %v732_v19, %v1372_v23 }
 0x2a0   :  { %v1489_v48 = vmul.f32 %v1356_v63, %v265_v41  ;;  %v723_v31 = vadd.f32 %v715_v6, %v699_v32  ;;  %v716_v7 = vmul.f32 %v1265_v54, %v1407_v15  ;;  %v740_v45 = vmul.f32 %v732_v19, %v1410_v16 }
 0x2a1   :  { %v375_v44 = vpop.permute.xlu1 %374  ;;  %v746_v25 = vadd.f32 %v738_v3, %v722_v12  ;;  %v484_v36 = vmul.f32 %v1259_v50, %v1478_v39  ;;  %497 = vrot.lane.b32.xlu0 %v491_v46, %s1086_s7  ;;  %v741_v6 = vmul.f32 %v732_v19, %v1401_v11 }
 0x2a2   :  { %v378_v10 = vsel %vm376_vm3, %v371_v5, %v375_v44  ;;  %v384_v52 = vsel %vm376_vm3, %v375_v44, %v363_v27  ;;  %v1506_v5 = vmul.f32 %v1381_v33, %v1235_v43  ;;  %v747_v41 = vadd.f32 %v739_v29, %v723_v31 }
 0x2a3   :  { %v1501_v24 = vmul.f32 %v1375_v28, %v384_v52  ;;  %754 = vrot.lane.b32.xlu1 %v746_v25, %s1087_s25  ;;  %v492_v63 = vadd.f32 %v484_v36, %v468_v9  ;;  %v1509_v27 = vmul.f32 %v1384_v61, %v378_v10  ;;  %v470_v28 = vadd.f32 %v462_v21, %v446_v35  ;;  %v580_v52 = vpop.permute.xlu0 %579 }
 0x2a4   :  { %v445_v25 = vmul.f32 %v1202_v8, %v1489_v48  ;;  %v701_v43 = vmul.f32 %v1261_v51, %v1367_v22  ;;  %v724_v61 = vadd.f32 %v716_v7, %v700_v26  ;;  %v461_v32 = vmul.f32 %v1257_v49, %v1506_v5 }
 0x2a5   :  { %v486_v3 = vmul.f32 %v1259_v50, %v1501_v24  ;;  %501 = vrot.lane.b32.xlu0 %v492_v63, %s1086_s7  ;;  %v485_v12 = vmul.f32 %v1259_v50, %v1509_v27  ;;  %v717_v8 = vmul.f32 %v1265_v54, %v1378_v30  ;;  %v702_v51 = vmul.f32 %v1267_v56, %v1420_v42 }
 0x2a6   :  { %v748_v46 = vadd.f32 %v740_v45, %v724_v61  ;;  %v469_v9 = vadd.f32 %v461_v32, %v445_v25  ;;  %v718_v50 = vmul.f32 %v1269_v38, %v1427_v53  ;;  %v703_v54 = vmul.f32 %v1267_v56, %v1430_v59 }
 0x2a7   :  { %758 = vrot.lane.b32.xlu1 %v747_v41, %s1087_s25  ;;  %v494_v33 = vadd.f32 %v486_v3, %v470_v28  ;;  %v725_v35 = vadd.f32 %v717_v8, %v701_v43  ;;  %v704_v10 = vmul.f32 %v1267_v56, %v1489_v48  ;;  %v719_v63 = vmul.f32 %v1269_v38, %v1437_v62 }
 0x2a8   :  { %v493_v29 = vadd.f32 %v485_v12, %v469_v9  ;;  %v726_v36 = vadd.f32 %v718_v50, %v702_v51  ;;  %v720_v41 = vmul.f32 %v1269_v38, %v1506_v5  ;;  %v705_v25 = vmul.f32 %v1267_v56, %v1462_v18  ;;  %v616_v43 = vpop.permute.xlu0 %615 }
 0x2a9   :  { %509 = vrot.lane.b32.xlu0 %v494_v33, %s1086_s7  ;;  %v749_v49 = vadd.f32 %v741_v6, %v725_v35  ;;  %v727_v45 = vadd.f32 %v719_v63, %v703_v54  ;;  %v721_v32 = vmul.f32 %v1269_v38, %v1459_v4 }
 0x2aa   :  { %v728_v3 = vadd.f32 %v720_v41, %v704_v10 }
 0x2ab   :  { %762 = vrot.lane.b32.xlu1 %v748_v46, %s1087_s25  ;;  %v729_v38 = vadd.f32 %v721_v32, %v705_v25 }
 0x2ad   :  { %505 = vrot.lane.b32.xlu0 %v493_v29, %s1086_s7 }
 0x2ae   :  { %v736_v19 = vpop.permute.xlu1 %735 }
 0x2af   :  { %v742_v44 = vmul.f32 %v736_v19, %v1450_v40  ;;  %766 = vrot.lane.b32.xlu1 %v749_v49, %s1087_s25  ;;  %v743_v21 = vmul.f32 %v736_v19, %v1478_v39  ;;  %v744_v31 = vmul.f32 %v736_v19, %v1509_v27  ;;  %v745_v33 = vmul.f32 %v736_v19, %v1501_v24 }
 0x2b0   :  { %v622_v49 = vmul.f32 %v616_v43, %v1343_v47 }
 0x2b1   :  { %v750_v26 = vadd.f32 %v742_v44, %v726_v36  ;;  %v751_v28 = vadd.f32 %v743_v21, %v727_v45  ;;  %v752_v61 = vadd.f32 %v744_v31, %v728_v3  ;;  %v753_v54 = vadd.f32 %v745_v33, %v729_v38 }
 0x2b3   :  { %756 = vrot.lane.b32.xlu0 %v750_v26, %s1087_s25  ;;  %v576_v7 = vpop.permute.xlu1 %575  ;;  %v588_v26 = vmul.f32 %v580_v52, %v1489_v48 }
 0x2b4   :  { %v582_v12 = vmul.f32 %v576_v7, %v1306_v17  ;;  %v583_v6 = vmul.f32 %v576_v7, %v1331_v37  ;;  %v584_v46 = vmul.f32 %v576_v7, %v1389_v34  ;;  %v585_v8 = vmul.f32 %v576_v7, %v1367_v22 }
 0x2b5   :  { %v623_v22 = vmul.f32 %v616_v43, %v1372_v23  ;;  %v624_v34 = vmul.f32 %v616_v43, %v1410_v16  ;;  %v586_v16 = vmul.f32 %v580_v52, %v1420_v42 }
 0x2b7   :  { %760 = vrot.lane.b32.xlu0 %v751_v28, %s1087_s25 }
 0x2b8   :  { %v592_v9 = vpop.permute.xlu1 %591 }
 0x2b9   :  { %v598_v56 = vmul.f32 %v592_v9, %v1310_v20  ;;  %v599_v51 = vmul.f32 %v592_v9, %v1350_v55  ;;  %v600_v35 = vmul.f32 %v592_v9, %v1407_v15  ;;  %v601_v29 = vmul.f32 %v592_v9, %v1378_v30 }
 0x2ba   :  { %v625_v20 = vmul.f32 %v616_v43, %v1401_v11  ;;  %v587_v11 = vmul.f32 %v580_v52, %v1430_v59 }
 0x2bb   :  { %v606_v50 = vadd.f32 %v598_v56, %v582_v12  ;;  %v607_v17 = vadd.f32 %v599_v51, %v583_v6  ;;  %v608_v19 = vadd.f32 %v600_v35, %v584_v46  ;;  %v609_v37 = vadd.f32 %v601_v29, %v585_v8  ;;  %764 = vrot.lane.b32.xlu0 %v752_v61, %s1087_s25  ;;  %v33_v61 = vld [vmem:[%s1730_s6 + $0x8] sm:$0x77] }
 0x2bc   :  { %v596_v55 = vpop.permute.xlu1 %595  ;;  %v533_v46 = vrot.slane %v33_v61, %v1276_v58  ;;  %v649_v35 = vrot.slane %v33_v61, %v1271_v57  ;;  %v653_v29 = vrot.slane %v33_v61, %v1286_v2 }
 0x2bd   :  { %v602_v15 = vmul.f32 %v596_v55, %v1427_v53  ;;  %v603_v30 = vmul.f32 %v596_v55, %v1437_v62  ;;  %v604_v47 = vmul.f32 %v596_v55, %v1506_v5  ;;  %v605_v44 = vmul.f32 %v596_v55, %v1459_v4 }
 0x2be   :  { %v631_v36 = vadd.f32 %v623_v22, %v607_v17  ;;  %v1572_v10 = vadd.f32 %v622_v49, %v606_v50  ;;  %v1574_v21 = vadd.f32 %v624_v34, %v608_v19  ;;  %v1576_v23 = vadd.f32 %v625_v20, %v609_v37 }
 0x2bf   :  { %v589_v53 = vmul.f32 %v580_v52, %v1462_v18  ;;  %768 = vrot.lane.b32.xlu0 %v753_v54, %s1087_s25  ;;  %v610_v62 = vadd.f32 %v602_v15, %v586_v16  ;;  %v611_v5 = vadd.f32 %v603_v30, %v587_v11  ;;  %v612_v4 = vadd.f32 %v604_v47, %v588_v26 }
 0x2c0   :  { %v537_v50 = vrot.slane %v33_v61, %v1282_v0  ;;  %v790_v19 = vrot.slane %v33_v61, %v1284_v1  ;;  %v794_v34 = vrot.slane %v33_v61, %v1299_v13  ;;  %v669_v54 = vrot.slane %v649_v35, %v1271_v57 }
 0x2c1   :  { %v613_v63 = vadd.f32 %v605_v44, %v589_v53  ;;  %v620_v31 = vpop.permute.xlu1 %619  ;;  %v673_v15 = vrot.slane %v653_v29, %v1271_v57 }
 0x2c2   :  { %v626_v7 = vmul.f32 %v620_v31, %v1450_v40  ;;  %v627_v45 = vmul.f32 %v620_v31, %v1478_v39  ;;  %v628_v41 = vmul.f32 %v620_v31, %v1509_v27  ;;  %v629_v42 = vmul.f32 %v620_v31, %v1501_v24  ;;  %v32_v40 = vld [vmem:[%s1730_s6] sm:$0x77] }
 0x2c3   :  { %v529_v27 = vrot.slane %v32_v40, %v1282_v0  ;;  %v645_v24 = vrot.slane %v32_v40, %v1286_v2  ;;  %v525_v33 = vrot.slane %v32_v40, %v1276_v58  ;;  %v641_v12 = vrot.slane %v32_v40, %v1271_v57 }
 0x2c4   :  { %v1587_v59 = vadd.f32 %v626_v7, %v610_v62  ;;  %v1589_v48 = vadd.f32 %v627_v45, %v611_v5  ;;  %v1591_v18 = vadd.f32 %v628_v41, %v612_v4  ;;  %v1593_v52 = vadd.f32 %v629_v42, %v613_v63 }
 0x2c5   :  { %v1609_v6 = vrot.slane %v529_v27, %v1276_v58  ;;  %v782_v8 = vrot.slane %v32_v40, %v1284_v1  ;;  %v786_v9 = vrot.slane %v32_v40, %v1299_v13  ;;  %v1615_v56 = vrot.slane %v645_v24, %v1271_v57 }
 0x2c6   :  { %v545_v38 = vrot.slane %v525_v33, %v1276_v58  ;;  %v661_v37 = vrot.slane %v641_v12, %v1271_v57  ;;  %v553_v2 = vrot.slane %v533_v46, %v1276_v58  ;;  %v557_v11 = vrot.slane %v537_v50, %v1276_v58 }
 0x2c7   :  { %v802_v55 = vrot.slane %v782_v8, %v1284_v1  ;;  %v806_v0 = vrot.slane %v786_v9, %v1284_v1  ;;  %v675_v13 = vmul.f32 %v1615_v56, %v631_v36  ;;  %v810_v53 = vrot.slane %v790_v19, %v1284_v1 }
 0x2c8   :  { %v674_v62 = vmul.f32 %v661_v37, %v1572_v10  ;;  %v814_v4 = vrot.slane %v794_v34, %v1284_v1  ;;  %v676_v58 = vmul.f32 %v669_v54, %v1574_v21  ;;  %v677_v10 = vmul.f32 %v673_v15, %v1576_v23 }
 0x2c9   :  { %v678_v34 = vmul.f32 %v661_v37, %v1587_v59 }
 0x303   :  { %v496_v28 = vpop.permute.xlu1 %495 }
 0x307   :  { %v500_v3 = vpop.permute.xlu1 %499 }
 0x308   :  { %v516_v51 = vsel %vm511_vm4, %v496_v28, %v500_v3 }
 0x309   :  { %v559_v20 = vmul.f32 %v1609_v6, %v516_v51 }
 0x30b   :  { %v508_v25 = vpop.permute.xlu1 %507  ;;  %v683_v63 = vadd.f32 %v675_v13, %v559_v20 }
 0x30c   :  { %v518_v22 = vsel %vm511_vm4, %v508_v25, %v496_v28 }
 0x30d   :  { %v558_v16 = vmul.f32 %v545_v38, %v518_v22 }
 0x30f   :  { %v504_v39 = vpop.permute.xlu1 %503  ;;  %v682_v45 = vadd.f32 %v674_v62, %v558_v16 }
 0x310   :  { %v514_v30 = vsel %vm511_vm4, %v500_v3, %v504_v39  ;;  %v512_v57 = vsel %vm511_vm4, %v504_v39, %v508_v25 }
 0x311   :  { %v560_v31 = vmul.f32 %v553_v2, %v514_v30  ;;  %v561_v41 = vmul.f32 %v557_v11, %v512_v57 }
 0x313   :  { %v1600_v43 = vpop.permute.xlu0 %497  ;;  %v684_v1 = vadd.f32 %v676_v58, %v560_v31  ;;  %v685_v33 = vadd.f32 %v677_v10, %v561_v41 }
 0x315   :  { %v755_v32 = vpop.permute.xlu1 %754 }
 0x317   :  { %v502_v49 = vpop.permute.xlu0 %501 }
 0x318   :  { %v517_v23 = vsel %vm511_vm4, %v1600_v43, %v502_v49 }
 0x319   :  { %v759_v17 = vpop.permute.xlu1 %758  ;;  %v563_v35 = vmul.f32 %v1609_v6, %v517_v23 }
 0x31a   :  { %v775_v47 = vsel %vm770_vm5, %v755_v32, %v759_v17 }
 0x31b   :  { %v510_v44 = vpop.permute.xlu0 %509  ;;  %v815_v7 = vmul.f32 %v802_v55, %v775_v47 }
 0x31d   :  { %v763_v26 = vpop.permute.xlu1 %762  ;;  %v823_v39 = vadd.f32 %v815_v7, %v682_v45 }
 0x31e   :  { %v773_v5 = vsel %vm770_vm5, %v759_v17, %v763_v26  ;;  %v679_v17 = vmul.f32 %v1615_v56, %v1589_v48  ;;  %v681_v56 = vmul.f32 %v673_v15, %v1593_v52 }
 0x31f   :  { %v816_v36 = vmul.f32 %v806_v0, %v773_v5  ;;  %v506_v28 = vpop.permute.xlu0 %505 }
 0x320   :  { %v515_v29 = vsel %vm511_vm4, %v502_v49, %v506_v28  ;;  %v513_v20 = vsel %vm511_vm4, %v506_v28, %v510_v44  ;;  %v687_v6 = vadd.f32 %v679_v17, %v563_v35 }
 0x321   :  { %v824_v42 = vadd.f32 %v816_v36, %v683_v63  ;;  %v767_v3 = vpop.permute.xlu1 %766  ;;  %v564_v30 = vmul.f32 %v553_v2, %v515_v29  ;;  %v565_v16 = vmul.f32 %v557_v11, %v513_v20 }
 0x322   :  { %v771_v25 = vsel %vm770_vm5, %v763_v26, %v767_v3  ;;  %v777_v40 = vsel %vm770_vm5, %v767_v3, %v755_v32  ;;  %v519_v32 = vsel %vm511_vm4, %v510_v44, %v1600_v43  ;;  %v680_v26 = vmul.f32 %v669_v54, %v1591_v18 }
 0x323   :  { %v817_v27 = vmul.f32 %v810_v53, %v771_v25  ;;  %v818_v24 = vmul.f32 %v814_v4, %v777_v40  ;;  %v831_v21 = vadd.f32 %v824_v42, %v823_v39  ;;  %v562_v19 = vmul.f32 %v545_v38, %v519_v32 }
 0x324   :  { %v688_v37 = vadd.f32 %v680_v26, %v564_v30 }
 0x325   :  { %v825_v61 = vadd.f32 %v817_v27, %v684_v1  ;;  %v757_v12 = vpop.permute.xlu0 %756  ;;  %v826_v46 = vadd.f32 %v818_v24, %v685_v33  ;;  %v686_v13 = vadd.f32 %v678_v34, %v562_v19 }
 0x327   :  { %v832_v8 = vadd.f32 %v831_v21, %v825_v61 }
 0x329   :  { %v761_v9 = vpop.permute.xlu0 %760  ;;  %v833_v51 = vadd.f32 %v832_v8, %v826_v46 }
 0x32a   :  { %v776_v50 = vsel %vm770_vm5, %v757_v12, %v761_v9 }
 0x32b   :  { %834 = vadd.xlane.f32.xlu1 %v833_v51  ;;  %v819_v47 = vmul.f32 %v802_v55, %v776_v50  ;;  %v689_v55 = vadd.f32 %v681_v56, %v565_v16  ;;  %v1737_v16 = vld [vmem:[#allocation2_spill] sm:$0xff] }
 0x32d   :  { %v765_v22 = vpop.permute.xlu0 %764  ;;  %v827_v44 = vadd.f32 %v819_v47, %v686_v13 }
 0x32e   :  { %v774_v43 = vsel %vm770_vm5, %v761_v9, %v765_v22 }
 0x32f   :  { %v820_v49 = vmul.f32 %v806_v0, %v774_v43 }
 0x331   :  { %v828_v62 = vadd.f32 %v820_v49, %v687_v6  ;;  %v769_v48 = vpop.permute.xlu0 %768 }
 0x332   :  { %v772_v59 = vsel %vm770_vm5, %v765_v22, %v769_v48  ;;  %v778_v38 = vsel %vm770_vm5, %v769_v48, %v757_v12 }
 0x333   :  { %v821_v57 = vmul.f32 %v810_v53, %v772_v59  ;;  %v822_v2 = vmul.f32 %v814_v4, %v778_v38  ;;  %v836_v5 = vadd.f32 %v828_v62, %v827_v44 }
 0x335   :  { %v829_v0 = vadd.f32 %v821_v57, %v688_v37  ;;  %v830_v11 = vadd.f32 %v822_v2, %v689_v55 }
 0x337   :  { %v837_v63 = vadd.f32 %v836_v5, %v829_v0 }
 0x339   :  { %v838_v18 = vadd.f32 %v837_v63, %v830_v11 }
 0x33b   :  { %839 = vadd.xlane.f32.xlu0 %v838_v18 }
 0x3b4   :  { %v835_v54 = vpop.xlane.xlu1 %834 }
 0x3b5   :  { %v841_v31 = vmul.f32 0.001953125, %v835_v54 }
 0x3b7   :  { %v843_v52 = vsub.f32 %v823_v39, %v841_v31  ;;  %v844_v15 = vsub.f32 %v824_v42, %v841_v31  ;;  %v845_v7 = vsub.f32 %v825_v61, %v841_v31  ;;  %v846_v36 = vsub.f32 %v826_v46, %v841_v31 }
 0x3b9   :  { %v851_v45 = vmul.f32 %v843_v52, %v843_v52  ;;  %v852_v60 = vmul.f32 %v844_v15, %v844_v15  ;;  %v853_v58 = vmul.f32 %v845_v7, %v845_v7  ;;  %v854_v28 = vmul.f32 %v846_v36, %v846_v36 }
 0x3bb   :  { %v859_v41 = vadd.f32 %v852_v60, %v851_v45  ;;  %v1015_v45 = vld [vmem:[%s1732_s1 + $0x18] sm:$0xff] }
 0x3bc   :  { %1019 = vst [vmem:[%s1733_s8 + $0x18] sm:$0xff] %v1015_v45 }
 0x3bd   :  { %v860_v53 = vadd.f32 %v859_v41, %v853_v58 }
 0x3bf   :  { %v861_v4 = vadd.f32 %v860_v53, %v854_v28 }
 0x3c1   :  { %862 = vadd.xlane.f32.xlu0 %v861_v4 }
 0x3c4   :  { %v840_v3 = vpop.xlane.xlu0 %839 }
 0x3c5   :  { %v842_v10 = vmul.f32 0.001953125, %v840_v3 }
 0x3c7   :  { %v847_v25 = vsub.f32 %v827_v44, %v842_v10  ;;  %v848_v40 = vsub.f32 %v828_v62, %v842_v10  ;;  %v849_v1 = vsub.f32 %v829_v0, %v842_v10  ;;  %v850_v27 = vsub.f32 %v830_v11, %v842_v10 }
 0x3c9   :  { %v855_v24 = vmul.f32 %v847_v25, %v847_v25  ;;  %v856_v33 = vmul.f32 %v848_v40, %v848_v40  ;;  %v857_v39 = vmul.f32 %v849_v1, %v849_v1  ;;  %v858_v61 = vmul.f32 %v850_v27, %v850_v27 }
 0x3cb   :  { %v864_v42 = vadd.f32 %v856_v33, %v855_v24 }
 0x3cd   :  { %v865_v12 = vadd.f32 %v864_v42, %v857_v39 }
 0x3cf   :  { %v866_v21 = vadd.f32 %v865_v12, %v858_v61 }
 0x3d1   :  { %867 = vadd.xlane.f32.xlu1 %v866_v21 }
 0x44a   :  { %v863_v46 = vpop.xlane.xlu0 %862 }
 0x44b   :  { %v869_v8 = vmul.f32 0.001953125, %v863_v46 }
 0x44d   :  { %v871_v23 = vadd.f32 1e-05, %v869_v8 }
 0x44f   :  { %1069 = vrsqrt.f32 %v871_v23 }
 0x45a   :  { %v868_v9 = vpop.xlane.xlu1 %867 }
 0x45b   :  { %v870_v51 = vmul.f32 0.001953125, %v868_v9 }
 0x45c   :  { %v1070_v35 = vpop.eup %1069 }
 0x45d   :  { %v872_v32 = vadd.f32 1e-05, %v870_v51  ;;  %v876_v29 = vmul.f32 %v1070_v35, %v844_v15  ;;  %v878_v50 = vmul.f32 %v1070_v35, %v846_v36  ;;  %v875_v17 = vmul.f32 %v1070_v35, %v843_v52  ;;  %v1012_v15 = vld [vmem:[%s1732_s1] sm:$0xff]  ;;  %v1014_v36 = vld [vmem:[%s1732_s1 + $0x10] sm:$0xff] }
 0x45e   :  { %v877_v19 = vmul.f32 %v1070_v35, %v845_v7  ;;  %v1013_v7 = vld [vmem:[%s1732_s1 + $0x8] sm:$0xff]  ;;  %1016 = vst [vmem:[%s1733_s8] sm:$0xff] %v1012_v15  ;;  %1018 = vst [vmem:[%s1733_s8 + $0x10] sm:$0xff] %v1014_v36 }
 0x45f   :  { %1071 = vrsqrt.f32 %v872_v32  ;;  %v884_v30 = vmul.f32 %v876_v29, %v1158_v14  ;;  %v886_v47 = vmul.f32 %v878_v50, %v1158_v14  ;;  %v883_v49 = vmul.f32 %v875_v17, %v1158_v14  ;;  %1017 = vst [vmem:[%s1733_s8 + $0x8] sm:$0xff] %v1013_v7 }
 0x460   :  { %v885_v13 = vmul.f32 %v877_v19, %v1158_v14  ;;  %v891_v14 = vld [vmem:[%s1731_s4] sm:$0xf] }
 0x46c   :  { %v1072_v22 = vpop.eup %1071 }
 0x46d   :  { %v880_v34 = vmul.f32 %v1072_v22, %v848_v40  ;;  %v882_v20 = vmul.f32 %v1072_v22, %v850_v27  ;;  %v879_v43 = vmul.f32 %v1072_v22, %v847_v25  ;;  %v881_v6 = vmul.f32 %v1072_v22, %v849_v1 }
 0x46f   :  { %v888_v26 = vmul.f32 %v880_v34, %v1737_v16  ;;  %v890_v62 = vmul.f32 %v882_v20, %v1737_v16  ;;  %v887_v48 = vmul.f32 %v879_v43, %v1737_v16  ;;  %v889_v56 = vmul.f32 %v881_v6, %v1737_v16 }
 0x471   :  { %v893_v59 = vpack.c.bf16 %v888_v26, %v884_v30  ;;  %v895_v38 = vpack.c.bf16 %v890_v62, %v886_v47  ;;  %v892_v37 = vpack.c.bf16 %v887_v48, %v883_v49  ;;  %v894_v44 = vpack.c.bf16 %v889_v56, %v885_v13 }
 0x473   :  { %914 = vmatprep.subr.bf16.mxu0 %v893_v59  ;;  %955 = vmatprep.subr.bf16.mxu1 %v895_v38 }
 0x474   :  { %915 = vmatpush1.bf16.msra.mxu0 %v892_v37  ;;  %956 = vmatpush1.bf16.msra.mxu1 %v894_v44 }
 0x477   :  { %1033 = vmatmul.mubr.msk.bf16.vlgmr.msra.gmra.mxu0 %vm896_vm6, %v891_v14  ;;  %1034 = vmatmul.mubr.msk.bf16.vlgmr.msra.gmra.mxu1 %vm896_vm6, %v891_v14 }
 0x537   :  { %v934_v57 = vpop.f32.mrf.mxu0  ;;  %v975_v2 = vpop.f32.mrf.mxu1 }
 0x539   :  { %v936_v55 = vpop.f32.mrf.mxu0  ;;  %v977_v0 = vpop.f32.mrf.mxu1 }
 0x53a   :  { %v982_v5 = vadd.f32 %v936_v55, %v934_v57 }
 0x53b   :  { %v938_v11 = vpop.f32.mrf.mxu0  ;;  %v979_v63 = vpop.f32.mrf.mxu1 }
 0x53c   :  { %v983_v18 = vadd.f32 %v982_v5, %v975_v2 }
 0x53d   :  { %v939_v54 = vpop.f32.mrf.mxu0  ;;  %v980_v31 = vpop.f32.mrf.mxu1 }
 0x53e   :  { %v984_v52 = vadd.f32 %v983_v18, %v977_v0 }
 0x540   :  { %985 = vadd.xlane.f32.xlu0 %v984_v52 }
 0x5c9   :  { %v986_v60 = vpop.xlane.xlu0 %985 }
 0x5ca   :  { %v987_v58 = vmul.f32 0.001953125, %v986_v60 }
 0x5cc   :  { %v988_v41 = vsub.f32 %v934_v57, %v987_v58  ;;  %v989_v28 = vsub.f32 %v936_v55, %v987_v58  ;;  %v990_v53 = vsub.f32 %v975_v2, %v987_v58  ;;  %v991_v4 = vsub.f32 %v977_v0, %v987_v58 }
 0x5ce   :  { %v992_v3 = vmul.f32 %v988_v41, %v988_v41  ;;  %v993_v10 = vmul.f32 %v989_v28, %v989_v28  ;;  %v994_v25 = vmul.f32 %v990_v53, %v990_v53  ;;  %v995_v1 = vmul.f32 %v991_v4, %v991_v4 }
 0x5d0   :  { %v996_v40 = vadd.f32 %v993_v10, %v992_v3 }
 0x5d2   :  { %v997_v27 = vadd.f32 %v996_v40, %v994_v25 }
 0x5d4   :  { %v998_v24 = vadd.f32 %v997_v27, %v995_v1 }
 0x5d6   :  { %999 = vadd.xlane.f32.xlu1 %v998_v24 }
 0x65f   :  { %v1000_v33 = vpop.xlane.xlu1 %999 }
 0x660   :  { %v1001_v39 = vmul.f32 0.001953125, %v1000_v33 }
 0x662   :  { %v1002_v42 = vadd.f32 1e-05, %v1001_v39 }
 0x664   :  { %1073 = vrsqrt.f32 %v1002_v42 }
 0x671   :  { %v1074_v61 = vpop.eup %1073 }
 0x672   :  { %v1004_v12 = vmul.f32 %v1074_v61, %v988_v41  ;;  %v1005_v21 = vmul.f32 %v1074_v61, %v989_v28  ;;  %v1006_v46 = vmul.f32 %v1074_v61, %v990_v53  ;;  %v1007_v8 = vmul.f32 %v1074_v61, %v991_v4 }
 0x674   :  { %v1008_v23 = vmax.f32 %v1004_v12, 0.0  ;;  %v1009_v9 = vmax.f32 %v1005_v21, 0.0  ;;  %v1010_v51 = vmax.f32 %v1006_v46, 0.0  ;;  %v1011_v32 = vmax.f32 %v1007_v8, 0.0 }
 0x676   :  { %1020 = vst [vmem:[%s1733_s8 + $0x20] sm:$0xff] %v1008_v23  ;;  %1021 = vst [vmem:[%s1733_s8 + $0x28] sm:$0xff] %v1009_v9 }
 0x677   :  { %1022 = vst [vmem:[%s1733_s8 + $0x30] sm:$0xff] %v1010_v51  ;;  %1023 = vst [vmem:[%s1733_s8 + $0x38] sm:$0xff] %v1011_v32 }

</bundles_post_ra>
